<compile_context>
chip_gen: v7x
topology: tpu7x:2x2x1
jax: 0.10.0
libtpu: 0.0.40
codegen_flags: <defaults>
</compile_context>

<pallas_src>
import functools

import jax
import jax.numpy as jnp
from jax.experimental import pallas as pl
from jax.experimental.pallas import tpu as pltpu

NEG_SLOPE = 0.2
BN_EPS = 1e-5


def _lrelu(x):
    return jnp.where(x > 0, x, NEG_SLOPE * x)


# ---------------------------------------------------------------------------
# Fused Pallas kernel: conv1 + LReLU, conv2 + BN + LReLU, conv3 + batch mean
# ---------------------------------------------------------------------------
def _disc_fused_kernel(p_ref, w1t_ref, w2t_ref, g_ref, b_ref, w3t_ref, o_ref,
                       *, inv_batch):
    # p_ref : (KK=16, K1, M2)  per layer-2 tap: gathered layer-1 patches
    # w1t   : (C1, K1)         layer-1 weight, GEMM-packed & transposed
    # w2t   : (KK, C2, C1)     layer-2 weight, one (C2, C1) matrix per tap
    # w3t   : (C2, M2)         layer-3 weight map, tiled over the batch
    w1t = w1t_ref[...]
    kk = p_ref.shape[0]

    # ---- Layers 1 & 2, fused per layer-2 kernel tap -------------------------
    # y1k = LeakyReLU(W1^T @ p_k) is the layer-1 output gathered at the
    # stride-2 / pad-1 positions tap k reads (zero columns where the tap reads
    # padding, since LReLU(W1^T @ 0) = 0).  acc accumulates the layer-2 conv.
    acc = jnp.zeros((w2t_ref.shape[1], p_ref.shape[2]), jnp.float32)
    for k in range(kk):                     # unrolled at trace time (16 taps)
        y1k = _lrelu(jnp.dot(w1t, p_ref[k],
                             preferred_element_type=jnp.float32))      # (C1, M2)
        acc = acc + jnp.dot(w2t_ref[k], y1k,
                            preferred_element_type=jnp.float32)        # (C2, M2)

    # ---- BatchNorm2d (training-mode batch stats) + LeakyReLU ----------------
    # Columns enumerate (n, oh, ow), so per-row (= per-channel) stats are the
    # BatchNorm2d batch statistics (biased variance, eps=1e-5).
    mean = jnp.mean(acc, axis=1, keepdims=True)                        # (C2, 1)
    var = jnp.mean((acc - mean) ** 2, axis=1, keepdims=True)
    y2 = (acc - mean) * jax.lax.rsqrt(var + BN_EPS)
    y2 = _lrelu(y2 * g_ref[...] + b_ref[...])                          # (C2, M2)

    # ---- Layer 3 (4x4 valid conv -> one logit per sample) + batch mean ------
    # A 1-column GEMM is wasteful on the MXU: do it as a VPU multiply with the
    # pre-tiled weight map and a full reduction (output.mean(0).view(1)).
    prod = y2 * w3t_ref[...]                                           # (C2, M2)
    col = jnp.sum(prod, axis=0, keepdims=True)                         # (1, M2)
    tot = jnp.sum(col, axis=1, keepdims=True)                          # (1, 1)
    o_ref[...] = tot * inv_batch


# ---------------------------------------------------------------------------
# Host-side glue (plain JAX, trace-time shapes only; pad/slice/transpose ops)
# ---------------------------------------------------------------------------
def _im2col(x_nhwc, kh, kw, stride, pad):
    n, h, w, c = x_nhwc.shape
    xp = jnp.pad(x_nhwc, ((0, 0), (pad, pad), (pad, pad), (0, 0)))
    oh = (h + 2 * pad - kh) // stride + 1
    ow = (w + 2 * pad - kw) // stride + 1
    cols = []
    for i in range(kh):
        for j in range(kw):
            cols.append(xp[:, i: i + stride * oh: stride,
                            j: j + stride * ow: stride, :])
    patches = jnp.concatenate(cols, axis=-1)              # (n, oh, ow, kh*kw*c)
    return patches.reshape(n * oh * ow, kh * kw * c), oh, ow


def _tap_gather_patches(p1, n, oh1, ow1, kh, kw, stride, pad):
    """For each layer-2 kernel tap, gather the layer-1 im2col patches at the
    stride/pad source positions that tap reads (zero rows where the tap falls
    in the zero padding of the layer-1 output).

    Returns (kh*kw, K1, n*oh2*ow2), lane dim ordered (n, oh2, ow2)."""
    k1 = p1.shape[-1]
    p1sp = p1.reshape(n, oh1, ow1, k1)
    p1p = jnp.pad(p1sp, ((0, 0), (pad, pad), (pad, pad), (0, 0)))
    oh2 = (oh1 + 2 * pad - kh) // stride + 1
    ow2 = (ow1 + 2 * pad - kw) // stride + 1
    taps = []
    for i in range(kh):
        for j in range(kw):
            t = p1p[:, i: i + stride * oh2: stride,
                       j: j + stride * ow2: stride, :]    # (n, oh2, ow2, K1)
            taps.append(t.reshape(n * oh2 * ow2, k1))
    p_taps = jnp.stack(taps, axis=0)                      # (KK, M2, K1)
    return jnp.transpose(p_taps, (0, 2, 1)), oh2, ow2     # (KK, K1, M2)


def _w_to_gemm(w):
    # PyTorch conv weight (Cout, Cin, KH, KW) -> (KH*KW*Cin, Cout) with the
    # same (kh, kw, cin) ordering used by _im2col / _tap_gather_patches.
    cout, cin, kh, kw = w.shape
    return jnp.transpose(w, (2, 3, 1, 0)).reshape(kh * kw * cin, cout)


# ---------------------------------------------------------------------------
# Parameters (deterministic, synthetic; DCGAN-like N(0, 0.02) init), pre-packed
# ---------------------------------------------------------------------------
def init_params(key, in_depth=4, first_depth=8):
    k1, k2, k3 = jax.random.split(key, 3)
    std = 0.02
    c1, c2 = first_depth, first_depth * 2
    w1 = std * jax.random.normal(k1, (c1, in_depth, 4, 4), jnp.float32)
    w2 = std * jax.random.normal(k2, (c2, c1, 4, 4), jnp.float32)
    w3 = std * jax.random.normal(k3, (1, c2, 4, 4), jnp.float32)
    # TODO(synk): n_add > 0 (extra 3x3 conv blocks) and in_size > 16 (deeper
    # shrink stacks) are not instantiated; the reference defaults yield this
    # exact 3-layer network for in_size=16.
    return {
        # GEMM-packed / transposed so channels land on sublanes and the
        # (batch*spatial) dim on lanes inside the kernel.
        "w1t": _w_to_gemm(w1).T,                                       # (C1, 16*Cin)
        "w2t": _w_to_gemm(w2).reshape(16, c1, c2).transpose(0, 2, 1),  # (16, C2, C1)
        "bn_gamma": jnp.ones((c2, 1), jnp.float32),
        "bn_beta": jnp.zeros((c2, 1), jnp.float32),
        "w3t": _w_to_gemm(w3).reshape(16, c2).T,                       # (C2, 16)
    }


# ---------------------------------------------------------------------------
# Forward pass
# ---------------------------------------------------------------------------
@jax.jit
def discriminator_forward(x_nchw, params):
    x = jnp.transpose(x_nchw, (0, 2, 3, 1)).astype(jnp.float32)   # NCHW -> NHWC
    n = x.shape[0]

    # Host-side (XLA) im2col of the raw input + per-tap gather for layer 2.
    # Both are pad/slice/reshape only; inside the kernel everything is pure
    # leading-axis indexing + MXU/VPU work.
    p1, oh1, ow1 = _im2col(x, 4, 4, 2, 1)                 # (n*64, 16*Cin)
    p_taps, oh2, ow2 = _tap_gather_patches(p1, n, oh1, ow1, 4, 4, 2, 1)

    c1, k1 = params["w1t"].shape
    c2 = params["w2t"].shape[1]
    kk = p_taps.shape[0]
    m2 = n * oh2 * ow2

    # Final conv weight map tiled over the batch (one column per (n, oy, ox)).
    w3t_full = jnp.tile(params["w3t"], (1, n))            # (C2, M2)

    args = (p_taps, params["w1t"], params["w2t"],
            params["bn_gamma"], params["bn_beta"], w3t_full)

    flops = (kk * 2 * c1 * k1 * m2          # per-tap layer-1 GEMMs
             + kk * 2 * c2 * c1 * m2        # per-tap layer-2 GEMMs
             + 16 * c2 * m2)                # BN / LReLU / final reduction
    bytes_accessed = sum(int(a.size) * a.dtype.itemsize for a in args) + 4

    def full_spec(shape):
        nd = len(shape)
        return pl.BlockSpec(shape, lambda i, _nd=nd: (0,) * _nd)

    kernel = functools.partial(_disc_fused_kernel, inv_batch=1.0 / n)

    out = pl.pallas_call(
        kernel,
        grid=(1,),
        in_specs=[full_spec(a.shape) for a in args],
        out_specs=full_spec((1, 1)),
        out_shape=jax.ShapeDtypeStruct((1, 1), jnp.float32),
        compiler_params=pltpu.CompilerParams(dimension_semantics=("arbitrary",)),
        cost_estimate=pl.CostEstimate(flops=flops, transcendentals=c2,
                                      bytes_accessed=bytes_accessed),
    )(*args)
    return out.reshape(1)


if __name__ == "__main__":
    key = jax.random.PRNGKey(0)
    kx, kp = jax.random.split(key)

    batch, in_depth, in_size, first_depth = 2, 4, 16, 8
    x = jax.random.normal(kx, (batch, in_depth, in_size, in_size), jnp.float32)
    params = init_params(kp, in_depth=in_depth, first_depth=first_depth)

    out = discriminator_forward(x, params)
    out = jax.block_until_ready(out)
    assert out.shape == (1,) and bool(jnp.all(jnp.isfinite(out)))
    print("KERNEL_OK")
</pallas_src>

<mosaic_0001>
module attributes {stable_mosaic.version = 11 : i64} {
  func.func @_disc_fused_kernel(%arg0: i32, %arg1: memref<16x64x32xf32, #tpu.memory_space<vmem>>, %arg2: memref<8x64xf32, #tpu.memory_space<vmem>>, %arg3: memref<16x16x8xf32, #tpu.memory_space<vmem>>, %arg4: memref<16x1xf32, #tpu.memory_space<vmem>>, %arg5: memref<16x1xf32, #tpu.memory_space<vmem>>, %arg6: memref<16x32xf32, #tpu.memory_space<vmem>>, %arg7: memref<1x1xf32, #tpu.memory_space<vmem>>) attributes {dimension_semantics = [#tpu.dimension_semantics<arbitrary>], iteration_bounds = array<i64: 1>, scalar_prefetch = 0 : i64, scratch_operands = 0 : i64, tpu.core_type = #tpu.core_type<tc>, window_params = [{pipeline_mode = #tpu.pipeline_mode<synchronous>, transform_indices = @transform_0, window_bounds = array<i64: 16, 64, 32>}, {pipeline_mode = #tpu.pipeline_mode<synchronous>, transform_indices = @transform_1, window_bounds = array<i64: 8, 64>}, {pipeline_mode = #tpu.pipeline_mode<synchronous>, transform_indices = @transform_2, window_bounds = array<i64: 16, 16, 8>}, {pipeline_mode = #tpu.pipeline_mode<synchronous>, transform_indices = @transform_3, window_bounds = array<i64: 16, 1>}, {pipeline_mode = #tpu.pipeline_mode<synchronous>, transform_indices = @transform_4, window_bounds = array<i64: 16, 1>}, {pipeline_mode = #tpu.pipeline_mode<synchronous>, transform_indices = @transform_5, window_bounds = array<i64: 16, 32>}, {pipeline_mode = #tpu.pipeline_mode<synchronous>, transform_indices = @transform_6, window_bounds = array<i64: 1, 1>}]} {
    %c0 = arith.constant 0 : index
    %c0_0 = arith.constant 0 : index
    %0 = vector.load %arg2[%c0, %c0_0] : memref<8x64xf32, #tpu.memory_space<vmem>>, vector<8x64xf32>
    %cst = arith.constant 0.000000e+00 : f32
    %1 = vector.broadcast %cst : f32 to vector<16x32xf32>
    %c0_1 = arith.constant 0 : index
    %c0_2 = arith.constant 0 : index
    %c0_3 = arith.constant 0 : index
    %2 = vector.load %arg1[%c0_1, %c0_2, %c0_3] : memref<16x64x32xf32, #tpu.memory_space<vmem>>, vector<1x64x32xf32>
    %3 = vector.shape_cast %2 : vector<1x64x32xf32> to vector<64x32xf32>
    %cst_4 = arith.constant dense<0.000000e+00> : vector<8x32xf32>
    %4 = tpu.matmul %0, %3, %cst_4 {dimension_numbers = #tpu.dot_dimension_numbers<[1], [0], [0], [1], [0, 0, 1, 1], [], []>} : vector<8x64xf32>, vector<64x32xf32>, vector<8x32xf32> -> vector<8x32xf32>
    %cst_5 = arith.constant 0.000000e+00 : f32
    %5 = vector.broadcast %cst_5 : f32 to vector<8x32xf32>
    %6 = arith.cmpf ogt, %4, %5 : vector<8x32xf32>
    %cst_6 = arith.constant 2.000000e-01 : f32
    %7 = vector.broadcast %cst_6 : f32 to vector<8x32xf32>
    %8 = arith.mulf %7, %4 : vector<8x32xf32>
    %9 = arith.select %6, %4, %8 : vector<8x32xi1>, vector<8x32xf32>
    %c0_7 = arith.constant 0 : index
    %c0_8 = arith.constant 0 : index
    %c0_9 = arith.constant 0 : index
    %10 = vector.load %arg3[%c0_7, %c0_8, %c0_9] : memref<16x16x8xf32, #tpu.memory_space<vmem>>, vector<1x16x8xf32>
    %11 = vector.shape_cast %10 : vector<1x16x8xf32> to vector<16x8xf32>
    %cst_10 = arith.constant dense<0.000000e+00> : vector<16x32xf32>
    %12 = tpu.matmul %11, %9, %cst_10 {dimension_numbers = #tpu.dot_dimension_numbers<[1], [0], [0], [1], [0, 0, 1, 1], [], []>} : vector<16x8xf32>, vector<8x32xf32>, vector<16x32xf32> -> vector<16x32xf32>
    %13 = arith.addf %1, %12 : vector<16x32xf32>
    %c1 = arith.constant 1 : index
    %c0_11 = arith.constant 0 : index
    %c0_12 = arith.constant 0 : index
    %14 = vector.load %arg1[%c1, %c0_11, %c0_12] : memref<16x64x32xf32, #tpu.memory_space<vmem>>, vector<1x64x32xf32>
    %15 = vector.shape_cast %14 : vector<1x64x32xf32> to vector<64x32xf32>
    %cst_13 = arith.constant dense<0.000000e+00> : vector<8x32xf32>
    %16 = tpu.matmul %0, %15, %cst_13 {dimension_numbers = #tpu.dot_dimension_numbers<[1], [0], [0], [1], [0, 0, 1, 1], [], []>} : vector<8x64xf32>, vector<64x32xf32>, vector<8x32xf32> -> vector<8x32xf32>
    %cst_14 = arith.constant 0.000000e+00 : f32
    %17 = vector.broadcast %cst_14 : f32 to vector<8x32xf32>
    %18 = arith.cmpf ogt, %16, %17 : vector<8x32xf32>
    %cst_15 = arith.constant 2.000000e-01 : f32
    %19 = vector.broadcast %cst_15 : f32 to vector<8x32xf32>
    %20 = arith.mulf %19, %16 : vector<8x32xf32>
    %21 = arith.select %18, %16, %20 : vector<8x32xi1>, vector<8x32xf32>
    %c1_16 = arith.constant 1 : index
    %c0_17 = arith.constant 0 : index
    %c0_18 = arith.constant 0 : index
    %22 = vector.load %arg3[%c1_16, %c0_17, %c0_18] : memref<16x16x8xf32, #tpu.memory_space<vmem>>, vector<1x16x8xf32>
    %23 = vector.shape_cast %22 : vector<1x16x8xf32> to vector<16x8xf32>
    %cst_19 = arith.constant dense<0.000000e+00> : vector<16x32xf32>
    %24 = tpu.matmul %23, %21, %cst_19 {dimension_numbers = #tpu.dot_dimension_numbers<[1], [0], [0], [1], [0, 0, 1, 1], [], []>} : vector<16x8xf32>, vector<8x32xf32>, vector<16x32xf32> -> vector<16x32xf32>
    %25 = arith.addf %13, %24 : vector<16x32xf32>
    %c2 = arith.constant 2 : index
    %c0_20 = arith.constant 0 : index
    %c0_21 = arith.constant 0 : index
    %26 = vector.load %arg1[%c2, %c0_20, %c0_21] : memref<16x64x32xf32, #tpu.memory_space<vmem>>, vector<1x64x32xf32>
    %27 = vector.shape_cast %26 : vector<1x64x32xf32> to vector<64x32xf32>
    %cst_22 = arith.constant dense<0.000000e+00> : vector<8x32xf32>
    %28 = tpu.matmul %0, %27, %cst_22 {dimension_numbers = #tpu.dot_dimension_numbers<[1], [0], [0], [1], [0, 0, 1, 1], [], []>} : vector<8x64xf32>, vector<64x32xf32>, vector<8x32xf32> -> vector<8x32xf32>
    %cst_23 = arith.constant 0.000000e+00 : f32
    %29 = vector.broadcast %cst_23 : f32 to vector<8x32xf32>
    %30 = arith.cmpf ogt, %28, %29 : vector<8x32xf32>
    %cst_24 = arith.constant 2.000000e-01 : f32
    %31 = vector.broadcast %cst_24 : f32 to vector<8x32xf32>
    %32 = arith.mulf %31, %28 : vector<8x32xf32>
    %33 = arith.select %30, %28, %32 : vector<8x32xi1>, vector<8x32xf32>
    %c2_25 = arith.constant 2 : index
    %c0_26 = arith.constant 0 : index
    %c0_27 = arith.constant 0 : index
    %34 = vector.load %arg3[%c2_25, %c0_26, %c0_27] : memref<16x16x8xf32, #tpu.memory_space<vmem>>, vector<1x16x8xf32>
    %35 = vector.shape_cast %34 : vector<1x16x8xf32> to vector<16x8xf32>
    %cst_28 = arith.constant dense<0.000000e+00> : vector<16x32xf32>
    %36 = tpu.matmul %35, %33, %cst_28 {dimension_numbers = #tpu.dot_dimension_numbers<[1], [0], [0], [1], [0, 0, 1, 1], [], []>} : vector<16x8xf32>, vector<8x32xf32>, vector<16x32xf32> -> vector<16x32xf32>
    %37 = arith.addf %25, %36 : vector<16x32xf32>
    %c3 = arith.constant 3 : index
    %c0_29 = arith.constant 0 : index
    %c0_30 = arith.constant 0 : index
    %38 = vector.load %arg1[%c3, %c0_29, %c0_30] : memref<16x64x32xf32, #tpu.memory_space<vmem>>, vector<1x64x32xf32>
    %39 = vector.shape_cast %38 : vector<1x64x32xf32> to vector<64x32xf32>
    %cst_31 = arith.constant dense<0.000000e+00> : vector<8x32xf32>
    %40 = tpu.matmul %0, %39, %cst_31 {dimension_numbers = #tpu.dot_dimension_numbers<[1], [0], [0], [1], [0, 0, 1, 1], [], []>} : vector<8x64xf32>, vector<64x32xf32>, vector<8x32xf32> -> vector<8x32xf32>
    %cst_32 = arith.constant 0.000000e+00 : f32
    %41 = vector.broadcast %cst_32 : f32 to vector<8x32xf32>
    %42 = arith.cmpf ogt, %40, %41 : vector<8x32xf32>
    %cst_33 = arith.constant 2.000000e-01 : f32
    %43 = vector.broadcast %cst_33 : f32 to vector<8x32xf32>
    %44 = arith.mulf %43, %40 : vector<8x32xf32>
    %45 = arith.select %42, %40, %44 : vector<8x32xi1>, vector<8x32xf32>
    %c3_34 = arith.constant 3 : index
    %c0_35 = arith.constant 0 : index
    %c0_36 = arith.constant 0 : index
    %46 = vector.load %arg3[%c3_34, %c0_35, %c0_36] : memref<16x16x8xf32, #tpu.memory_space<vmem>>, vector<1x16x8xf32>
    %47 = vector.shape_cast %46 : vector<1x16x8xf32> to vector<16x8xf32>
    %cst_37 = arith.constant dense<0.000000e+00> : vector<16x32xf32>
    %48 = tpu.matmul %47, %45, %cst_37 {dimension_numbers = #tpu.dot_dimension_numbers<[1], [0], [0], [1], [0, 0, 1, 1], [], []>} : vector<16x8xf32>, vector<8x32xf32>, vector<16x32xf32> -> vector<16x32xf32>
    %49 = arith.addf %37, %48 : vector<16x32xf32>
    %c4 = arith.constant 4 : index
    %c0_38 = arith.constant 0 : index
    %c0_39 = arith.constant 0 : index
    %50 = vector.load %arg1[%c4, %c0_38, %c0_39] : memref<16x64x32xf32, #tpu.memory_space<vmem>>, vector<1x64x32xf32>
    %51 = vector.shape_cast %50 : vector<1x64x32xf32> to vector<64x32xf32>
    %cst_40 = arith.constant dense<0.000000e+00> : vector<8x32xf32>
    %52 = tpu.matmul %0, %51, %cst_40 {dimension_numbers = #tpu.dot_dimension_numbers<[1], [0], [0], [1], [0, 0, 1, 1], [], []>} : vector<8x64xf32>, vector<64x32xf32>, vector<8x32xf32> -> vector<8x32xf32>
    %cst_41 = arith.constant 0.000000e+00 : f32
    %53 = vector.broadcast %cst_41 : f32 to vector<8x32xf32>
    %54 = arith.cmpf ogt, %52, %53 : vector<8x32xf32>
    %cst_42 = arith.constant 2.000000e-01 : f32
    %55 = vector.broadcast %cst_42 : f32 to vector<8x32xf32>
    %56 = arith.mulf %55, %52 : vector<8x32xf32>
    %57 = arith.select %54, %52, %56 : vector<8x32xi1>, vector<8x32xf32>
    %c4_43 = arith.constant 4 : index
    %c0_44 = arith.constant 0 : index
    %c0_45 = arith.constant 0 : index
    %58 = vector.load %arg3[%c4_43, %c0_44, %c0_45] : memref<16x16x8xf32, #tpu.memory_space<vmem>>, vector<1x16x8xf32>
    %59 = vector.shape_cast %58 : vector<1x16x8xf32> to vector<16x8xf32>
    %cst_46 = arith.constant dense<0.000000e+00> : vector<16x32xf32>
    %60 = tpu.matmul %59, %57, %cst_46 {dimension_numbers = #tpu.dot_dimension_numbers<[1], [0], [0], [1], [0, 0, 1, 1], [], []>} : vector<16x8xf32>, vector<8x32xf32>, vector<16x32xf32> -> vector<16x32xf32>
    %61 = arith.addf %49, %60 : vector<16x32xf32>
    %c5 = arith.constant 5 : index
    %c0_47 = arith.constant 0 : index
    %c0_48 = arith.constant 0 : index
    %62 = vector.load %arg1[%c5, %c0_47, %c0_48] : memref<16x64x32xf32, #tpu.memory_space<vmem>>, vector<1x64x32xf32>
    %63 = vector.shape_cast %62 : vector<1x64x32xf32> to vector<64x32xf32>
    %cst_49 = arith.constant dense<0.000000e+00> : vector<8x32xf32>
    %64 = tpu.matmul %0, %63, %cst_49 {dimension_numbers = #tpu.dot_dimension_numbers<[1], [0], [0], [1], [0, 0, 1, 1], [], []>} : vector<8x64xf32>, vector<64x32xf32>, vector<8x32xf32> -> vector<8x32xf32>
    %cst_50 = arith.constant 0.000000e+00 : f32
    %65 = vector.broadcast %cst_50 : f32 to vector<8x32xf32>
    %66 = arith.cmpf ogt, %64, %65 : vector<8x32xf32>
    %cst_51 = arith.constant 2.000000e-01 : f32
    %67 = vector.broadcast %cst_51 : f32 to vector<8x32xf32>
    %68 = arith.mulf %67, %64 : vector<8x32xf32>
    %69 = arith.select %66, %64, %68 : vector<8x32xi1>, vector<8x32xf32>
    %c5_52 = arith.constant 5 : index
    %c0_53 = arith.constant 0 : index
    %c0_54 = arith.constant 0 : index
    %70 = vector.load %arg3[%c5_52, %c0_53, %c0_54] : memref<16x16x8xf32, #tpu.memory_space<vmem>>, vector<1x16x8xf32>
    %71 = vector.shape_cast %70 : vector<1x16x8xf32> to vector<16x8xf32>
    %cst_55 = arith.constant dense<0.000000e+00> : vector<16x32xf32>
    %72 = tpu.matmul %71, %69, %cst_55 {dimension_numbers = #tpu.dot_dimension_numbers<[1], [0], [0], [1], [0, 0, 1, 1], [], []>} : vector<16x8xf32>, vector<8x32xf32>, vector<16x32xf32> -> vector<16x32xf32>
    %73 = arith.addf %61, %72 : vector<16x32xf32>
    %c6 = arith.constant 6 : index
    %c0_56 = arith.constant 0 : index
    %c0_57 = arith.constant 0 : index
    %74 = vector.load %arg1[%c6, %c0_56, %c0_57] : memref<16x64x32xf32, #tpu.memory_space<vmem>>, vector<1x64x32xf32>
    %75 = vector.shape_cast %74 : vector<1x64x32xf32> to vector<64x32xf32>
    %cst_58 = arith.constant dense<0.000000e+00> : vector<8x32xf32>
    %76 = tpu.matmul %0, %75, %cst_58 {dimension_numbers = #tpu.dot_dimension_numbers<[1], [0], [0], [1], [0, 0, 1, 1], [], []>} : vector<8x64xf32>, vector<64x32xf32>, vector<8x32xf32> -> vector<8x32xf32>
    %cst_59 = arith.constant 0.000000e+00 : f32
    %77 = vector.broadcast %cst_59 : f32 to vector<8x32xf32>
    %78 = arith.cmpf ogt, %76, %77 : vector<8x32xf32>
    %cst_60 = arith.constant 2.000000e-01 : f32
    %79 = vector.broadcast %cst_60 : f32 to vector<8x32xf32>
    %80 = arith.mulf %79, %76 : vector<8x32xf32>
    %81 = arith.select %78, %76, %80 : vector<8x32xi1>, vector<8x32xf32>
    %c6_61 = arith.constant 6 : index
    %c0_62 = arith.constant 0 : index
    %c0_63 = arith.constant 0 : index
    %82 = vector.load %arg3[%c6_61, %c0_62, %c0_63] : memref<16x16x8xf32, #tpu.memory_space<vmem>>, vector<1x16x8xf32>
    %83 = vector.shape_cast %82 : vector<1x16x8xf32> to vector<16x8xf32>
    %cst_64 = arith.constant dense<0.000000e+00> : vector<16x32xf32>
    %84 = tpu.matmul %83, %81, %cst_64 {dimension_numbers = #tpu.dot_dimension_numbers<[1], [0], [0], [1], [0, 0, 1, 1], [], []>} : vector<16x8xf32>, vector<8x32xf32>, vector<16x32xf32> -> vector<16x32xf32>
    %85 = arith.addf %73, %84 : vector<16x32xf32>
    %c7 = arith.constant 7 : index
    %c0_65 = arith.constant 0 : index
    %c0_66 = arith.constant 0 : index
    %86 = vector.load %arg1[%c7, %c0_65, %c0_66] : memref<16x64x32xf32, #tpu.memory_space<vmem>>, vector<1x64x32xf32>
    %87 = vector.shape_cast %86 : vector<1x64x32xf32> to vector<64x32xf32>
    %cst_67 = arith.constant dense<0.000000e+00> : vector<8x32xf32>
    %88 = tpu.matmul %0, %87, %cst_67 {dimension_numbers = #tpu.dot_dimension_numbers<[1], [0], [0], [1], [0, 0, 1, 1], [], []>} : vector<8x64xf32>, vector<64x32xf32>, vector<8x32xf32> -> vector<8x32xf32>
    %cst_68 = arith.constant 0.000000e+00 : f32
    %89 = vector.broadcast %cst_68 : f32 to vector<8x32xf32>
    %90 = arith.cmpf ogt, %88, %89 : vector<8x32xf32>
    %cst_69 = arith.constant 2.000000e-01 : f32
    %91 = vector.broadcast %cst_69 : f32 to vector<8x32xf32>
    %92 = arith.mulf %91, %88 : vector<8x32xf32>
    %93 = arith.select %90, %88, %92 : vector<8x32xi1>, vector<8x32xf32>
    %c7_70 = arith.constant 7 : index
    %c0_71 = arith.constant 0 : index
    %c0_72 = arith.constant 0 : index
    %94 = vector.load %arg3[%c7_70, %c0_71, %c0_72] : memref<16x16x8xf32, #tpu.memory_space<vmem>>, vector<1x16x8xf32>
    %95 = vector.shape_cast %94 : vector<1x16x8xf32> to vector<16x8xf32>
    %cst_73 = arith.constant dense<0.000000e+00> : vector<16x32xf32>
    %96 = tpu.matmul %95, %93, %cst_73 {dimension_numbers = #tpu.dot_dimension_numbers<[1], [0], [0], [1], [0, 0, 1, 1], [], []>} : vector<16x8xf32>, vector<8x32xf32>, vector<16x32xf32> -> vector<16x32xf32>
    %97 = arith.addf %85, %96 : vector<16x32xf32>
    %c8 = arith.constant 8 : index
    %c0_74 = arith.constant 0 : index
    %c0_75 = arith.constant 0 : index
    %98 = vector.load %arg1[%c8, %c0_74, %c0_75] : memref<16x64x32xf32, #tpu.memory_space<vmem>>, vector<1x64x32xf32>
    %99 = vector.shape_cast %98 : vector<1x64x32xf32> to vector<64x32xf32>
    %cst_76 = arith.constant dense<0.000000e+00> : vector<8x32xf32>
    %100 = tpu.matmul %0, %99, %cst_76 {dimension_numbers = #tpu.dot_dimension_numbers<[1], [0], [0], [1], [0, 0, 1, 1], [], []>} : vector<8x64xf32>, vector<64x32xf32>, vector<8x32xf32> -> vector<8x32xf32>
    %cst_77 = arith.constant 0.000000e+00 : f32
    %101 = vector.broadcast %cst_77 : f32 to vector<8x32xf32>
    %102 = arith.cmpf ogt, %100, %101 : vector<8x32xf32>
    %cst_78 = arith.constant 2.000000e-01 : f32
    %103 = vector.broadcast %cst_78 : f32 to vector<8x32xf32>
    %104 = arith.mulf %103, %100 : vector<8x32xf32>
    %105 = arith.select %102, %100, %104 : vector<8x32xi1>, vector<8x32xf32>
    %c8_79 = arith.constant 8 : index
    %c0_80 = arith.constant 0 : index
    %c0_81 = arith.constant 0 : index
    %106 = vector.load %arg3[%c8_79, %c0_80, %c0_81] : memref<16x16x8xf32, #tpu.memory_space<vmem>>, vector<1x16x8xf32>
    %107 = vector.shape_cast %106 : vector<1x16x8xf32> to vector<16x8xf32>
    %cst_82 = arith.constant dense<0.000000e+00> : vector<16x32xf32>
    %108 = tpu.matmul %107, %105, %cst_82 {dimension_numbers = #tpu.dot_dimension_numbers<[1], [0], [0], [1], [0, 0, 1, 1], [], []>} : vector<16x8xf32>, vector<8x32xf32>, vector<16x32xf32> -> vector<16x32xf32>
    %109 = arith.addf %97, %108 : vector<16x32xf32>
    %c9 = arith.constant 9 : index
    %c0_83 = arith.constant 0 : index
    %c0_84 = arith.constant 0 : index
    %110 = vector.load %arg1[%c9, %c0_83, %c0_84] : memref<16x64x32xf32, #tpu.memory_space<vmem>>, vector<1x64x32xf32>
    %111 = vector.shape_cast %110 : vector<1x64x32xf32> to vector<64x32xf32>
    %cst_85 = arith.constant dense<0.000000e+00> : vector<8x32xf32>
    %112 = tpu.matmul %0, %111, %cst_85 {dimension_numbers = #tpu.dot_dimension_numbers<[1], [0], [0], [1], [0, 0, 1, 1], [], []>} : vector<8x64xf32>, vector<64x32xf32>, vector<8x32xf32> -> vector<8x32xf32>
    %cst_86 = arith.constant 0.000000e+00 : f32
    %113 = vector.broadcast %cst_86 : f32 to vector<8x32xf32>
    %114 = arith.cmpf ogt, %112, %113 : vector<8x32xf32>
    %cst_87 = arith.constant 2.000000e-01 : f32
    %115 = vector.broadcast %cst_87 : f32 to vector<8x32xf32>
    %116 = arith.mulf %115, %112 : vector<8x32xf32>
    %117 = arith.select %114, %112, %116 : vector<8x32xi1>, vector<8x32xf32>
    %c9_88 = arith.constant 9 : index
    %c0_89 = arith.constant 0 : index
    %c0_90 = arith.constant 0 : index
    %118 = vector.load %arg3[%c9_88, %c0_89, %c0_90] : memref<16x16x8xf32, #tpu.memory_space<vmem>>, vector<1x16x8xf32>
    %119 = vector.shape_cast %118 : vector<1x16x8xf32> to vector<16x8xf32>
    %cst_91 = arith.constant dense<0.000000e+00> : vector<16x32xf32>
    %120 = tpu.matmul %119, %117, %cst_91 {dimension_numbers = #tpu.dot_dimension_numbers<[1], [0], [0], [1], [0, 0, 1, 1], [], []>} : vector<16x8xf32>, vector<8x32xf32>, vector<16x32xf32> -> vector<16x32xf32>
    %121 = arith.addf %109, %120 : vector<16x32xf32>
    %c10 = arith.constant 10 : index
    %c0_92 = arith.constant 0 : index
    %c0_93 = arith.constant 0 : index
    %122 = vector.load %arg1[%c10, %c0_92, %c0_93] : memref<16x64x32xf32, #tpu.memory_space<vmem>>, vector<1x64x32xf32>
    %123 = vector.shape_cast %122 : vector<1x64x32xf32> to vector<64x32xf32>
    %cst_94 = arith.constant dense<0.000000e+00> : vector<8x32xf32>
    %124 = tpu.matmul %0, %123, %cst_94 {dimension_numbers = #tpu.dot_dimension_numbers<[1], [0], [0], [1], [0, 0, 1, 1], [], []>} : vector<8x64xf32>, vector<64x32xf32>, vector<8x32xf32> -> vector<8x32xf32>
    %cst_95 = arith.constant 0.000000e+00 : f32
    %125 = vector.broadcast %cst_95 : f32 to vector<8x32xf32>
    %126 = arith.cmpf ogt, %124, %125 : vector<8x32xf32>
    %cst_96 = arith.constant 2.000000e-01 : f32
    %127 = vector.broadcast %cst_96 : f32 to vector<8x32xf32>
    %128 = arith.mulf %127, %124 : vector<8x32xf32>
    %129 = arith.select %126, %124, %128 : vector<8x32xi1>, vector<8x32xf32>
    %c10_97 = arith.constant 10 : index
    %c0_98 = arith.constant 0 : index
    %c0_99 = arith.constant 0 : index
    %130 = vector.load %arg3[%c10_97, %c0_98, %c0_99] : memref<16x16x8xf32, #tpu.memory_space<vmem>>, vector<1x16x8xf32>
    %131 = vector.shape_cast %130 : vector<1x16x8xf32> to vector<16x8xf32>
    %cst_100 = arith.constant dense<0.000000e+00> : vector<16x32xf32>
    %132 = tpu.matmul %131, %129, %cst_100 {dimension_numbers = #tpu.dot_dimension_numbers<[1], [0], [0], [1], [0, 0, 1, 1], [], []>} : vector<16x8xf32>, vector<8x32xf32>, vector<16x32xf32> -> vector<16x32xf32>
    %133 = arith.addf %121, %132 : vector<16x32xf32>
    %c11 = arith.constant 11 : index
    %c0_101 = arith.constant 0 : index
    %c0_102 = arith.constant 0 : index
    %134 = vector.load %arg1[%c11, %c0_101, %c0_102] : memref<16x64x32xf32, #tpu.memory_space<vmem>>, vector<1x64x32xf32>
    %135 = vector.shape_cast %134 : vector<1x64x32xf32> to vector<64x32xf32>
    %cst_103 = arith.constant dense<0.000000e+00> : vector<8x32xf32>
    %136 = tpu.matmul %0, %135, %cst_103 {dimension_numbers = #tpu.dot_dimension_numbers<[1], [0], [0], [1], [0, 0, 1, 1], [], []>} : vector<8x64xf32>, vector<64x32xf32>, vector<8x32xf32> -> vector<8x32xf32>
    %cst_104 = arith.constant 0.000000e+00 : f32
    %137 = vector.broadcast %cst_104 : f32 to vector<8x32xf32>
    %138 = arith.cmpf ogt, %136, %137 : vector<8x32xf32>
    %cst_105 = arith.constant 2.000000e-01 : f32
    %139 = vector.broadcast %cst_105 : f32 to vector<8x32xf32>
    %140 = arith.mulf %139, %136 : vector<8x32xf32>
    %141 = arith.select %138, %136, %140 : vector<8x32xi1>, vector<8x32xf32>
    %c11_106 = arith.constant 11 : index
    %c0_107 = arith.constant 0 : index
    %c0_108 = arith.constant 0 : index
    %142 = vector.load %arg3[%c11_106, %c0_107, %c0_108] : memref<16x16x8xf32, #tpu.memory_space<vmem>>, vector<1x16x8xf32>
    %143 = vector.shape_cast %142 : vector<1x16x8xf32> to vector<16x8xf32>
    %cst_109 = arith.constant dense<0.000000e+00> : vector<16x32xf32>
    %144 = tpu.matmul %143, %141, %cst_109 {dimension_numbers = #tpu.dot_dimension_numbers<[1], [0], [0], [1], [0, 0, 1, 1], [], []>} : vector<16x8xf32>, vector<8x32xf32>, vector<16x32xf32> -> vector<16x32xf32>
    %145 = arith.addf %133, %144 : vector<16x32xf32>
    %c12 = arith.constant 12 : index
    %c0_110 = arith.constant 0 : index
    %c0_111 = arith.constant 0 : index
    %146 = vector.load %arg1[%c12, %c0_110, %c0_111] : memref<16x64x32xf32, #tpu.memory_space<vmem>>, vector<1x64x32xf32>
    %147 = vector.shape_cast %146 : vector<1x64x32xf32> to vector<64x32xf32>
    %cst_112 = arith.constant dense<0.000000e+00> : vector<8x32xf32>
    %148 = tpu.matmul %0, %147, %cst_112 {dimension_numbers = #tpu.dot_dimension_numbers<[1], [0], [0], [1], [0, 0, 1, 1], [], []>} : vector<8x64xf32>, vector<64x32xf32>, vector<8x32xf32> -> vector<8x32xf32>
    %cst_113 = arith.constant 0.000000e+00 : f32
    %149 = vector.broadcast %cst_113 : f32 to vector<8x32xf32>
    %150 = arith.cmpf ogt, %148, %149 : vector<8x32xf32>
    %cst_114 = arith.constant 2.000000e-01 : f32
    %151 = vector.broadcast %cst_114 : f32 to vector<8x32xf32>
    %152 = arith.mulf %151, %148 : vector<8x32xf32>
    %153 = arith.select %150, %148, %152 : vector<8x32xi1>, vector<8x32xf32>
    %c12_115 = arith.constant 12 : index
    %c0_116 = arith.constant 0 : index
    %c0_117 = arith.constant 0 : index
    %154 = vector.load %arg3[%c12_115, %c0_116, %c0_117] : memref<16x16x8xf32, #tpu.memory_space<vmem>>, vector<1x16x8xf32>
    %155 = vector.shape_cast %154 : vector<1x16x8xf32> to vector<16x8xf32>
    %cst_118 = arith.constant dense<0.000000e+00> : vector<16x32xf32>
    %156 = tpu.matmul %155, %153, %cst_118 {dimension_numbers = #tpu.dot_dimension_numbers<[1], [0], [0], [1], [0, 0, 1, 1], [], []>} : vector<16x8xf32>, vector<8x32xf32>, vector<16x32xf32> -> vector<16x32xf32>
    %157 = arith.addf %145, %156 : vector<16x32xf32>
    %c13 = arith.constant 13 : index
    %c0_119 = arith.constant 0 : index
    %c0_120 = arith.constant 0 : index
    %158 = vector.load %arg1[%c13, %c0_119, %c0_120] : memref<16x64x32xf32, #tpu.memory_space<vmem>>, vector<1x64x32xf32>
    %159 = vector.shape_cast %158 : vector<1x64x32xf32> to vector<64x32xf32>
    %cst_121 = arith.constant dense<0.000000e+00> : vector<8x32xf32>
    %160 = tpu.matmul %0, %159, %cst_121 {dimension_numbers = #tpu.dot_dimension_numbers<[1], [0], [0], [1], [0, 0, 1, 1], [], []>} : vector<8x64xf32>, vector<64x32xf32>, vector<8x32xf32> -> vector<8x32xf32>
    %cst_122 = arith.constant 0.000000e+00 : f32
    %161 = vector.broadcast %cst_122 : f32 to vector<8x32xf32>
    %162 = arith.cmpf ogt, %160, %161 : vector<8x32xf32>
    %cst_123 = arith.constant 2.000000e-01 : f32
    %163 = vector.broadcast %cst_123 : f32 to vector<8x32xf32>
    %164 = arith.mulf %163, %160 : vector<8x32xf32>
    %165 = arith.select %162, %160, %164 : vector<8x32xi1>, vector<8x32xf32>
    %c13_124 = arith.constant 13 : index
    %c0_125 = arith.constant 0 : index
    %c0_126 = arith.constant 0 : index
    %166 = vector.load %arg3[%c13_124, %c0_125, %c0_126] : memref<16x16x8xf32, #tpu.memory_space<vmem>>, vector<1x16x8xf32>
    %167 = vector.shape_cast %166 : vector<1x16x8xf32> to vector<16x8xf32>
    %cst_127 = arith.constant dense<0.000000e+00> : vector<16x32xf32>
    %168 = tpu.matmul %167, %165, %cst_127 {dimension_numbers = #tpu.dot_dimension_numbers<[1], [0], [0], [1], [0, 0, 1, 1], [], []>} : vector<16x8xf32>, vector<8x32xf32>, vector<16x32xf32> -> vector<16x32xf32>
    %169 = arith.addf %157, %168 : vector<16x32xf32>
    %c14 = arith.constant 14 : index
    %c0_128 = arith.constant 0 : index
    %c0_129 = arith.constant 0 : index
    %170 = vector.load %arg1[%c14, %c0_128, %c0_129] : memref<16x64x32xf32, #tpu.memory_space<vmem>>, vector<1x64x32xf32>
    %171 = vector.shape_cast %170 : vector<1x64x32xf32> to vector<64x32xf32>
    %cst_130 = arith.constant dense<0.000000e+00> : vector<8x32xf32>
    %172 = tpu.matmul %0, %171, %cst_130 {dimension_numbers = #tpu.dot_dimension_numbers<[1], [0], [0], [1], [0, 0, 1, 1], [], []>} : vector<8x64xf32>, vector<64x32xf32>, vector<8x32xf32> -> vector<8x32xf32>
    %cst_131 = arith.constant 0.000000e+00 : f32
    %173 = vector.broadcast %cst_131 : f32 to vector<8x32xf32>
    %174 = arith.cmpf ogt, %172, %173 : vector<8x32xf32>
    %cst_132 = arith.constant 2.000000e-01 : f32
    %175 = vector.broadcast %cst_132 : f32 to vector<8x32xf32>
    %176 = arith.mulf %175, %172 : vector<8x32xf32>
    %177 = arith.select %174, %172, %176 : vector<8x32xi1>, vector<8x32xf32>
    %c14_133 = arith.constant 14 : index
    %c0_134 = arith.constant 0 : index
    %c0_135 = arith.constant 0 : index
    %178 = vector.load %arg3[%c14_133, %c0_134, %c0_135] : memref<16x16x8xf32, #tpu.memory_space<vmem>>, vector<1x16x8xf32>
    %179 = vector.shape_cast %178 : vector<1x16x8xf32> to vector<16x8xf32>
    %cst_136 = arith.constant dense<0.000000e+00> : vector<16x32xf32>
    %180 = tpu.matmul %179, %177, %cst_136 {dimension_numbers = #tpu.dot_dimension_numbers<[1], [0], [0], [1], [0, 0, 1, 1], [], []>} : vector<16x8xf32>, vector<8x32xf32>, vector<16x32xf32> -> vector<16x32xf32>
    %181 = arith.addf %169, %180 : vector<16x32xf32>
    %c15 = arith.constant 15 : index
    %c0_137 = arith.constant 0 : index
    %c0_138 = arith.constant 0 : index
    %182 = vector.load %arg1[%c15, %c0_137, %c0_138] : memref<16x64x32xf32, #tpu.memory_space<vmem>>, vector<1x64x32xf32>
    %183 = vector.shape_cast %182 : vector<1x64x32xf32> to vector<64x32xf32>
    %cst_139 = arith.constant dense<0.000000e+00> : vector<8x32xf32>
    %184 = tpu.matmul %0, %183, %cst_139 {dimension_numbers = #tpu.dot_dimension_numbers<[1], [0], [0], [1], [0, 0, 1, 1], [], []>} : vector<8x64xf32>, vector<64x32xf32>, vector<8x32xf32> -> vector<8x32xf32>
    %cst_140 = arith.constant 0.000000e+00 : f32
    %185 = vector.broadcast %cst_140 : f32 to vector<8x32xf32>
    %186 = arith.cmpf ogt, %184, %185 : vector<8x32xf32>
    %cst_141 = arith.constant 2.000000e-01 : f32
    %187 = vector.broadcast %cst_141 : f32 to vector<8x32xf32>
    %188 = arith.mulf %187, %184 : vector<8x32xf32>
    %189 = arith.select %186, %184, %188 : vector<8x32xi1>, vector<8x32xf32>
    %c15_142 = arith.constant 15 : index
    %c0_143 = arith.constant 0 : index
    %c0_144 = arith.constant 0 : index
    %190 = vector.load %arg3[%c15_142, %c0_143, %c0_144] : memref<16x16x8xf32, #tpu.memory_space<vmem>>, vector<1x16x8xf32>
    %191 = vector.shape_cast %190 : vector<1x16x8xf32> to vector<16x8xf32>
    %cst_145 = arith.constant dense<0.000000e+00> : vector<16x32xf32>
    %192 = tpu.matmul %191, %189, %cst_145 {dimension_numbers = #tpu.dot_dimension_numbers<[1], [0], [0], [1], [0, 0, 1, 1], [], []>} : vector<16x8xf32>, vector<8x32xf32>, vector<16x32xf32> -> vector<16x32xf32>
    %193 = arith.addf %181, %192 : vector<16x32xf32>
    %cst_146 = arith.constant dense<0.000000e+00> : vector<16xf32>
    %194 = vector.multi_reduction <add>, %193, %cst_146 [1] : vector<16x32xf32> to vector<16xf32>
    %195 = vector.shape_cast %194 : vector<16xf32> to vector<16x1xf32>
    %cst_147 = arith.constant 3.200000e+01 : f32
    %196 = vector.broadcast %cst_147 : f32 to vector<16x1xf32>
    %197 = arith.divf %195, %196 : vector<16x1xf32>
    %198 = vector.broadcast %197 : vector<16x1xf32> to vector<16x32xf32>
    %199 = arith.subf %193, %198 : vector<16x32xf32>
    %200 = arith.mulf %199, %199 : vector<16x32xf32>
    %cst_148 = arith.constant dense<0.000000e+00> : vector<16xf32>
    %201 = vector.multi_reduction <add>, %200, %cst_148 [1] : vector<16x32xf32> to vector<16xf32>
    %202 = vector.shape_cast %201 : vector<16xf32> to vector<16x1xf32>
    %cst_149 = arith.constant 3.200000e+01 : f32
    %203 = vector.broadcast %cst_149 : f32 to vector<16x1xf32>
    %204 = arith.divf %202, %203 : vector<16x1xf32>
    %205 = vector.broadcast %197 : vector<16x1xf32> to vector<16x32xf32>
    %206 = arith.subf %193, %205 : vector<16x32xf32>
    %cst_150 = arith.constant 9.99999974E-6 : f32
    %207 = vector.broadcast %cst_150 : f32 to vector<16x1xf32>
    %208 = arith.addf %204, %207 : vector<16x1xf32>
    %209 = math.rsqrt %208 : vector<16x1xf32>
    %210 = vector.broadcast %209 : vector<16x1xf32> to vector<16x32xf32>
    %211 = arith.mulf %206, %210 : vector<16x32xf32>
    %c0_151 = arith.constant 0 : index
    %c0_152 = arith.constant 0 : index
    %212 = vector.load %arg4[%c0_151, %c0_152] : memref<16x1xf32, #tpu.memory_space<vmem>>, vector<16x1xf32>
    %213 = vector.broadcast %212 : vector<16x1xf32> to vector<16x32xf32>
    %214 = arith.mulf %211, %213 : vector<16x32xf32>
    %c0_153 = arith.constant 0 : index
    %c0_154 = arith.constant 0 : index
    %215 = vector.load %arg5[%c0_153, %c0_154] : memref<16x1xf32, #tpu.memory_space<vmem>>, vector<16x1xf32>
    %216 = vector.broadcast %215 : vector<16x1xf32> to vector<16x32xf32>
    %217 = arith.addf %214, %216 : vector<16x32xf32>
    %cst_155 = arith.constant 0.000000e+00 : f32
    %218 = vector.broadcast %cst_155 : f32 to vector<16x32xf32>
    %219 = arith.cmpf ogt, %217, %218 : vector<16x32xf32>
    %cst_156 = arith.constant 2.000000e-01 : f32
    %220 = vector.broadcast %cst_156 : f32 to vector<16x32xf32>
    %221 = arith.mulf %220, %217 : vector<16x32xf32>
    %222 = arith.select %219, %217, %221 : vector<16x32xi1>, vector<16x32xf32>
    %c0_157 = arith.constant 0 : index
    %c0_158 = arith.constant 0 : index
    %223 = vector.load %arg6[%c0_157, %c0_158] : memref<16x32xf32, #tpu.memory_space<vmem>>, vector<16x32xf32>
    %224 = arith.mulf %222, %223 : vector<16x32xf32>
    %cst_159 = arith.constant dense<0.000000e+00> : vector<32xf32>
    %225 = vector.multi_reduction <add>, %224, %cst_159 [0] : vector<16x32xf32> to vector<32xf32>
    %226 = vector.shape_cast %225 : vector<32xf32> to vector<1x32xf32>
    %cst_160 = arith.constant dense<0.000000e+00> : vector<1xf32>
    %227 = vector.multi_reduction <add>, %226, %cst_160 [1] : vector<1x32xf32> to vector<1xf32>
    %228 = vector.shape_cast %227 : vector<1xf32> to vector<1x1xf32>
    %cst_161 = arith.constant 5.000000e-01 : f32
    %229 = vector.broadcast %cst_161 : f32 to vector<1x1xf32>
    %230 = arith.mulf %228, %229 : vector<1x1xf32>
    %c0_162 = arith.constant 0 : index
    %c0_163 = arith.constant 0 : index
    %231 = vector.load %arg7[%c0_162, %c0_163] : memref<1x1xf32, #tpu.memory_space<vmem>>, vector<1x1xf32>
    tpu.vector_store %arg7[%c0_162, %c0_163], %230 {strides = array<i32>} : memref<1x1xf32, #tpu.memory_space<vmem>>, vector<1x1xf32>,
    return
  }
  func.func @transform_0(%arg0: i32) -> (i32, i32, i32) {
    %c0_i32 = arith.constant 0 : i32
    %c0_i32_0 = arith.constant 0 : i32
    %c0_i32_1 = arith.constant 0 : i32
    %c0_i32_2 = arith.constant 0 : i32
    return %c0_i32, %c0_i32_0, %c0_i32_1 : i32, i32, i32
  }
  func.func @transform_1(%arg0: i32) -> (i32, i32) {
    %c0_i32 = arith.constant 0 : i32
    %c0_i32_0 = arith.constant 0 : i32
    %c0_i32_1 = arith.constant 0 : i32
    return %c0_i32, %c0_i32_0 : i32, i32
  }
  func.func @transform_2(%arg0: i32) -> (i32, i32, i32) {
    %c0_i32 = arith.constant 0 : i32
    %c0_i32_0 = arith.constant 0 : i32
    %c0_i32_1 = arith.constant 0 : i32
    %c0_i32_2 = arith.constant 0 : i32
    return %c0_i32, %c0_i32_0, %c0_i32_1 : i32, i32, i32
  }
  func.func @transform_3(%arg0: i32) -> (i32, i32) {
    %c0_i32 = arith.constant 0 : i32
    %c0_i32_0 = arith.constant 0 : i32
    %c0_i32_1 = arith.constant 0 : i32
    return %c0_i32, %c0_i32_0 : i32, i32
  }
  func.func @transform_4(%arg0: i32) -> (i32, i32) {
    %c0_i32 = arith.constant 0 : i32
    %c0_i32_0 = arith.constant 0 : i32
    %c0_i32_1 = arith.constant 0 : i32
    return %c0_i32, %c0_i32_0 : i32, i32
  }
  func.func @transform_5(%arg0: i32) -> (i32, i32) {
    %c0_i32 = arith.constant 0 : i32
    %c0_i32_0 = arith.constant 0 : i32
    %c0_i32_1 = arith.constant 0 : i32
    return %c0_i32, %c0_i32_0 : i32, i32
  }
  func.func @transform_6(%arg0: i32) -> (i32, i32) {
    %c0_i32 = arith.constant 0 : i32
    %c0_i32_0 = arith.constant 0 : i32
    %c0_i32_1 = arith.constant 0 : i32
    return %c0_i32, %c0_i32_0 : i32, i32
  }
}

</mosaic_0001>

<bundles_post_ra>
// kernel: tile.9
= control target key start
LH: loop header
LB: loop body
LE: loop exit
PB: predicated region body
PF: predicated region fallthrough
CT: control target
= control target key end

     0   :  { %vm82_vm0 = vcmask 1047556   ;;  %vm84_vm1 = vcmask 130048   ;;  %vm103_vm2 = vcmask 261248   ;;  %s225_s0 = inlined_call_operand.vmem [shape: f32[16,2,16], index: 0, kind: input, shape index: {}]   ;;  %s226_s1 = inlined_call_operand.vmem [shape: f32[16,32], index: 1, kind: output, shape index: {}]  }
   0x1   :  { %v138_v0 = vld [vmem:[%s225_s0 + $0xe] sm:$0x3]  ;;  %v139_v1 = vld [vmem:[%s225_s0 + $0xc] sm:$0x3]  ;;  %v140_v2 = vld [vmem:[%s225_s0 + $0xa] sm:$0x3] }
   0x2   :  { %48 = vst [vmem:[#allocation0 + $0x38] sm:$0x3] %v138_v0  ;;  %53 = vst [vmem:[#allocation0 + $0x30] sm:$0x3] %v139_v1  ;;  %v141_v3 = vld [vmem:[%s225_s0 + $0x8] sm:$0x3] }
   0x3   :  { %58 = vst [vmem:[#allocation0 + $0x28] sm:$0x3] %v140_v2  ;;  %v142_v4 = vld [vmem:[%s225_s0 + $0x6] sm:$0x3]  ;;  %v143_v5 = vld [vmem:[%s225_s0 + $0x4] sm:$0x3] }
   0x4   :  { %63 = vst [vmem:[#allocation0 + $0x20] sm:$0x3] %v141_v3  ;;  %68 = vst [vmem:[#allocation0 + $0x18] sm:$0x3] %v142_v4  ;;  %v144_v6 = vld [vmem:[%s225_s0 + $0x2] sm:$0x3] }
   0x5   :  { %73 = vst [vmem:[#allocation0 + $0x10] sm:$0x3] %v143_v5  ;;  %v78_v7 = vld [vmem:[%s225_s0] sm:$0x3]  ;;  %77 = vst [vmem:[#allocation0 + $0x8] sm:$0x3] %v144_v6 }
   0x6   :  { %79 = vst [vmem:[#allocation0] sm:$0x3] %v78_v7  ;;  %v130_v8 = vld [vmem:[%s225_s0 + $0x1e] sm:$0x3]  ;;  %v131_v9 = vld [vmem:[%s225_s0 + $0x1c] sm:$0x3] }
   0x7   :  { %v132_v10 = vld [vmem:[%s225_s0 + $0x1a] sm:$0x3]  ;;  %8 = vst [vmem:[#allocation0 + $0x78] sm:$0x3] %v130_v8  ;;  %13 = vst [vmem:[#allocation0 + $0x70] sm:$0x3] %v131_v9 }
   0x8   :  { %18 = vst [vmem:[#allocation0 + $0x68] sm:$0x3] %v132_v10  ;;  %v133_v11 = vld [vmem:[%s225_s0 + $0x18] sm:$0x3]  ;;  %v134_v12 = vld [vmem:[%s225_s0 + $0x16] sm:$0x3] }
   0x9   :  { %v135_v13 = vld [vmem:[%s225_s0 + $0x14] sm:$0x3]  ;;  %23 = vst [vmem:[#allocation0 + $0x60] sm:$0x3] %v133_v11  ;;  %28 = vst [vmem:[#allocation0 + $0x58] sm:$0x3] %v134_v12 }
   0xa   :  { %33 = vst [vmem:[#allocation0 + $0x50] sm:$0x3] %v135_v13  ;;  %v136_v14 = vld [vmem:[%s225_s0 + $0x12] sm:$0x3]  ;;  %v137_v15 = vld [vmem:[%s225_s0 + $0x10] sm:$0x3] }
   0xb   :  { %38 = vst [vmem:[#allocation0 + $0x48] sm:$0x3] %v136_v14  ;;  %43 = vst [vmem:[#allocation0 + $0x40] sm:$0x3] %v137_v15  ;;  %s148_s0 = smov 16  }
   0xc   :  { %v98_v16 = vld [vmem:[#allocation0 + $0x1] ss:$8 sm:$0xf0]   ;;  %v81_v17 = vld [vmem:[#allocation0] ss:$8 sm:$0xf0]  }
   0xd   :  { %v96_v18 = vld [vmem:[#allocation0 + $0x1] ss:$8 sm:$0xf]   ;;  %v80_v19 = vld [vmem:[#allocation0] ss:$8 sm:$0xf]  }
   0xe   :  { %v100_v20 = vsel %vm82_vm0, %v98_v16, %v96_v18  ;;  %v83_v21 = vsel %vm82_vm0, %v81_v17, %v80_v19 }
   0xf   :  { %101 = vrot.lane.b32.xlu0 %v100_v20, %s148_s0  ;;  %85 = vst.msk [vmem:[%s226_s1] sm:$0xff] %vm84_vm1, %v83_v21  }
  0x10   :  { %v108_v22 = vld [vmem:[#allocation0 + $0x41] ss:$8 sm:$0xf0]   ;;  %v89_v23 = vld [vmem:[#allocation0 + $0x40] ss:$8 sm:$0xf0]  }
  0x12   :  { %v106_v24 = vld [vmem:[#allocation0 + $0x41] ss:$8 sm:$0xf]   ;;  %v87_v25 = vld [vmem:[#allocation0 + $0x40] ss:$8 sm:$0xf]  }
  0x13   :  { %v110_v26 = vsel %vm82_vm0, %v108_v22, %v106_v24  ;;  %v91_v27 = vsel %vm82_vm0, %v89_v23, %v87_v25 }
  0x14   :  { %145 = vst.msk [vmem:[%s226_s1 + $0x8] sm:$0xff] %vm84_vm1, %v91_v27   ;;  %111 = vrot.lane.b32.xlu0 %v110_v26, %s148_s0 }
  0x81   :  { %v102_v28 = vpop.permute.xlu0 %101  }
  0x82   :  { %104 = vst.msk [vmem:[%s226_s1] sm:$0xff] %vm103_vm2, %v102_v28  }
  0x86   :  { %v112_v29 = vpop.permute.xlu0 %111  }
  0x87   :  { %146 = vst.msk [vmem:[%s226_s1 + $0x8] sm:$0xff] %vm103_vm2, %v112_v29  }

// kernel: discriminator_forward.1
= control target key start
LH: loop header
LB: loop body
LE: loop exit
PB: predicated region body
PF: predicated region fallthrough
CT: control target
= control target key end

     0   :  { %v3838_v3 = vmov 0.0|0.0   ;;  %vm3839_vm0 = vmmov 0   ;;  %v3840_v10 = vmov 0.0   ;;  %s4565_s0 = inlined_call_operand.vmem [shape: f32[16,64,32], index: 0, kind: input, shape index: {}]   ;;  %s4566_s1 = inlined_call_operand.vmem [shape: f32[8,64], index: 1, kind: input, shape index: {}]   ;;  %s4567_s2 = inlined_call_operand.vmem [shape: f32[16,16,8], index: 2, kind: input, shape index: {}]   ;;  %s4568_s3 = inlined_call_operand.vmem [shape: f32[16,1], index: 3, kind: input, shape index: {}]   ;;  %s4569_s4 = inlined_call_operand.vmem [shape: f32[16,1], index: 4, kind: input, shape index: {}]   ;;  %s4570_s5 = inlined_call_operand.vmem [shape: f32[16,32], index: 5, kind: input, shape index: {}]   ;;  %s4571_s6 = inlined_call_operand.hbm [shape: f32[1,1], index: 6, kind: output, shape index: {}]  }
   0x1   :  { %v2808_v0 = vld [vmem:[%s4565_s0 + $0x40] sm:$0xff]  ;;  %v2809_v1 = vld [vmem:[%s4565_s0 + $0x48] sm:$0xff]  ;;  %v2810_v2 = vld [vmem:[%s4565_s0 + $0x50] sm:$0xff]  ;;  %3593 = vmatprep.subr.bf16.mxu1 %v3838_v3  ;;  %3581 = vmatprep.subr.bf16.mxu0 %v3838_v3 }
   0x2   :  { %v3594_v4 = vpack.c.bf16 %v2809_v1, %v2808_v0  ;;  %v2811_v5 = vld [vmem:[%s4565_s0 + $0x58] sm:$0xff]  ;;  %v25_v6 = vld [vmem:[%s4565_s0] sm:$0xff]  ;;  %v26_v7 = vld [vmem:[%s4565_s0 + $0x8] sm:$0xff]  ;;  %3232 = vmatprep.mubr.msk.f32.mxu1 %vm3839_vm0, %v3840_v10  ;;  %3213 = vmatprep.mubr.msk.f32.mxu0 %vm3839_vm0, %v3840_v10 }
   0x3   :  { %v3582_v8 = vpack.c.bf16 %v26_v7, %v25_v6  ;;  %v27_v9 = vld [vmem:[%s4565_s0 + $0x10] sm:$0xff]  ;;  %v3597_v11 = vpack.c.bf16 %v2811_v5, %v2810_v2  ;;  %v28_v12 = vld [vmem:[%s4565_s0 + $0x18] sm:$0xff]  ;;  %v2812_v13 = vld [vmem:[%s4565_s0 + $0x60] sm:$0xff] }
   0x4   :  { %3595 = vmatpush3.bf16.msra.mxu1 %v3594_v4  ;;  %v2813_v14 = vld [vmem:[%s4565_s0 + $0x68] sm:$0xff]  ;;  %v3585_v15 = vpack.c.bf16 %v28_v12, %v27_v9  ;;  %v29_v16 = vld [vmem:[%s4565_s0 + $0x20] sm:$0xff]  ;;  %v2814_v19 = vld [vmem:[%s4565_s0 + $0x70] sm:$0xff] }
   0x5   :  { %3596 = vmatprep.subr.bf16.mxu1 %v3838_v3  ;;  %3583 = vmatpush3.bf16.msra.mxu0 %v3582_v8  ;;  %v30_v17 = vld [vmem:[%s4565_s0 + $0x28] sm:$0xff]  ;;  %v3600_v18 = vpack.c.bf16 %v2813_v14, %v2812_v13  ;;  %v2815_v20 = vld [vmem:[%s4565_s0 + $0x78] sm:$0xff] }
   0x6   :  { %3584 = vmatprep.subr.bf16.mxu0 %v3838_v3  ;;  %v3588_v21 = vpack.c.bf16 %v30_v17, %v29_v16 }
   0x8   :  { %3598 = vmatpush3.bf16.msra.mxu1 %v3597_v11 }
   0x9   :  { %3599 = vmatprep.subr.bf16.mxu1 %v3838_v3  ;;  %3586 = vmatpush3.bf16.msra.mxu0 %v3585_v15 }
   0xa   :  { %11 = vsyncpa [#allocation3], 0  ;;  %3587 = vmatprep.subr.bf16.mxu0 %v3838_v3  ;;  %v31_v22 = vld [vmem:[%s4565_s0 + $0x30] sm:$0xff]  ;;  %v32_v23 = vld [vmem:[%s4565_s0 + $0x38] sm:$0xff]  ;;  %v3603_v24 = vpack.c.bf16 %v2815_v20, %v2814_v19  ;;  %vm33_vm1 = vcmask 523264   ;;  %vm197_vm2 = vcmask 64512  }
   0xb   :  { %v2823_v25 = vld [vmem:[%s4565_s0 + $0x80] sm:$0xff]  ;;  %v2824_v26 = vld [vmem:[%s4565_s0 + $0x88] sm:$0xff]  ;;  %v3591_v27 = vpack.c.bf16 %v32_v23, %v31_v22  ;;  %v2825_v30 = vld [vmem:[%s4565_s0 + $0x90] sm:$0xff] }
   0xc   :  { %3601 = vmatpush3.bf16.msra.mxu1 %v3600_v18  ;;  %v3947_v28 = vld [vmem:[%s4566_s1] sm:$0xff]  ;;  %v3606_v29 = vpack.c.bf16 %v2824_v26, %v2823_v25  ;;  %v2826_v31 = vld [vmem:[%s4565_s0 + $0x98] sm:$0xff]  ;;  %v2828_v34 = vld [vmem:[%s4565_s0 + $0xa8] sm:$0xff] }
   0xd   :  { %3602 = vmatprep.subr.bf16.mxu1 %v3838_v3  ;;  %3589 = vmatpush3.bf16.msra.mxu0 %v3588_v21  ;;  %v3609_v32 = vpack.c.bf16 %v2826_v31, %v2825_v30  ;;  %v2827_v33 = vld [vmem:[%s4565_s0 + $0xa0] sm:$0xff]  ;;  %v2829_v36 = vld [vmem:[%s4565_s0 + $0xb0] sm:$0xff]  ;;  %v2830_v37 = vld [vmem:[%s4565_s0 + $0xb8] sm:$0xff] }
   0xe   :  { %3590 = vmatprep.subr.bf16.mxu0 %v3838_v3  ;;  %v3612_v35 = vpack.c.bf16 %v2828_v34, %v2827_v33  ;;  %v3615_v38 = vpack.c.bf16 %v2830_v37, %v2829_v36  ;;  %v2817_v39 = vld [vmem:[%s4567_s2 + $0x10] sm:$0xff]  ;;  %v2849_v40 = vld [vmem:[%s4565_s0 + $0x100] sm:$0xff]  ;;  %v2850_v41 = vld [vmem:[%s4565_s0 + $0x108] sm:$0xff] }
   0xf   :  { %v3630_v42 = vpack.c.bf16 %v2850_v41, %v2849_v40  ;;  %v2851_v43 = vld [vmem:[%s4565_s0 + $0x110] sm:$0xff]  ;;  %v2852_v44 = vld [vmem:[%s4565_s0 + $0x118] sm:$0xff]  ;;  %v2853_v46 = vld [vmem:[%s4565_s0 + $0x120] sm:$0xff] }
  0x10   :  { %3604 = vmatpush3.bf16.msra.mxu1 %v3603_v24  ;;  %v3633_v45 = vpack.c.bf16 %v2852_v44, %v2851_v43  ;;  %v2854_v47 = vld [vmem:[%s4565_s0 + $0x128] sm:$0xff]  ;;  %v2855_v49 = vld [vmem:[%s4565_s0 + $0x130] sm:$0xff]  ;;  %v2856_v50 = vld [vmem:[%s4565_s0 + $0x138] sm:$0xff] }
  0x11   :  { %3605 = vmatprep.subr.bf16.mxu1 %v3838_v3  ;;  %3592 = vmatpush3.bf16.msra.mxu0 %v3591_v27  ;;  %v3636_v48 = vpack.c.bf16 %v2854_v47, %v2853_v46  ;;  %v3639_v51 = vpack.c.bf16 %v2856_v50, %v2855_v49  ;;  %v2862_v52 = vld [vmem:[%s4565_s0 + $0x140] sm:$0xff]  ;;  %v2863_v53 = vld [vmem:[%s4565_s0 + $0x148] sm:$0xff]  ;;  %v2864_v55 = vld [vmem:[%s4565_s0 + $0x150] sm:$0xff] }
  0x12   :  { %v3642_v54 = vpack.c.bf16 %v2863_v53, %v2862_v52  ;;  %v2865_v56 = vld [vmem:[%s4565_s0 + $0x158] sm:$0xff]  ;;  %v2866_v58 = vld [vmem:[%s4565_s0 + $0x160] sm:$0xff]  ;;  %v2867_v59 = vld [vmem:[%s4565_s0 + $0x168] sm:$0xff] }
  0x13   :  { %3233 = vmatmul.mubr.msk.f32.vlgmr.msra.gmra.mrb[0].mxu1 %vm33_vm1, %v3947_v28  ;;  %v3645_v57 = vpack.c.bf16 %v2865_v56, %v2864_v55  ;;  %v3648_v60 = vpack.c.bf16 %v2867_v59, %v2866_v58  ;;  %v2868_v61 = vld [vmem:[%s4565_s0 + $0x170] sm:$0xff]  ;;  %v2869_v62 = vld [vmem:[%s4565_s0 + $0x178] sm:$0xff]  ;;  %v110_v11 = vld [vmem:[%s4567_s2] sm:$0xff] }
  0x14   :  { %3607 = vmatpush3.bf16.msra.mxu1 %v3606_v29  ;;  %3214 = vmatmul.mubr.msk.f32.vlgmr.msra.gmra.mrb[0].mxu0 %vm33_vm1, %v3947_v28  ;;  %v3651_v63 = vpack.c.bf16 %v2869_v62, %v2868_v61  ;;  %v2818_v8 = vld [vmem:[%s4567_s2 + $0x18] sm:$0xff]  ;;  %v111_v12 = vld [vmem:[%s4567_s2 + $0x8] sm:$0xff]  ;;  %v2832_v13 = vld [vmem:[%s4567_s2 + $0x20] sm:$0xff] }
  0x15   :  { %3608 = vmatprep.subr.bf16.mxu1 %v3838_v3  ;;  %3261 = vmatprep.mubr.msk.f32.mxu1 %vm3839_vm0, %v3840_v10  ;;  %v2836_v15 = vld [vmem:[%s4565_s0 + $0xc0] sm:$0xff]  ;;  %v2837_v16 = vld [vmem:[%s4565_s0 + $0xc8] sm:$0xff]  ;;  %v2838_v22 = vld [vmem:[%s4565_s0 + $0xd0] sm:$0xff] }
  0x16   :  { %3237 = vmatprep.mubr.msk.f32.mxu0 %vm197_vm2, %v2817_v39  ;;  %v2833_v20 = vld [vmem:[%s4567_s2 + $0x28] sm:$0xff]  ;;  %v3618_v21 = vpack.c.bf16 %v2837_v16, %v2836_v15  ;;  %v2839_v23 = vld [vmem:[%s4565_s0 + $0xd8] sm:$0xff]  ;;  %v2840_v25 = vld [vmem:[%s4565_s0 + $0xe0] sm:$0xff] }
  0x17   :  { %v3621_v24 = vpack.c.bf16 %v2839_v23, %v2838_v22  ;;  %v2841_v26 = vld [vmem:[%s4565_s0 + $0xe8] sm:$0xff]  ;;  %v2842_v29 = vld [vmem:[%s4565_s0 + $0xf0] sm:$0xff]  ;;  %v2843_v30 = vld [vmem:[%s4565_s0 + $0xf8] sm:$0xff] }
  0x18   :  { %3610 = vmatpush3.bf16.msra.mxu1 %v3609_v32  ;;  %v3624_v27 = vpack.c.bf16 %v2841_v26, %v2840_v25  ;;  %v3627_v31 = vpack.c.bf16 %v2843_v30, %v2842_v29  ;;  %v2845_v34 = vld [vmem:[%s4567_s2 + $0x30] sm:$0xff]  ;;  %v2888_v37 = vld [vmem:[%s4565_s0 + $0x1c0] sm:$0xff]  ;;  %v2891_v41 = vld [vmem:[%s4565_s0 + $0x1d8] sm:$0xff] }
  0x19   :  { %3611 = vmatprep.subr.bf16.mxu1 %v3838_v3  ;;  %v2890_v40 = vld [vmem:[%s4565_s0 + $0x1d0] sm:$0xff]  ;;  %v2892_v43 = vld [vmem:[%s4565_s0 + $0x1e0] sm:$0xff]  ;;  %v2893_v44 = vld [vmem:[%s4565_s0 + $0x1e8] sm:$0xff] }
  0x1a   :  { %v2894_v46 = vld [vmem:[%s4565_s0 + $0x1f0] sm:$0xff]  ;;  %v2895_v47 = vld [vmem:[%s4565_s0 + $0x1f8] sm:$0xff]  ;;  %v2858_v56 = vld [vmem:[%s4567_s2 + $0x40] sm:$0xff] }
  0x1b   :  { %v2846_v55 = vld [vmem:[%s4567_s2 + $0x38] sm:$0xff]  ;;  %v2859_v59 = vld [vmem:[%s4567_s2 + $0x48] sm:$0xff]  ;;  %v2875_v61 = vld [vmem:[%s4565_s0 + $0x180] sm:$0xff] }
  0x1c   :  { %3613 = vmatpush3.bf16.msra.mxu1 %v3612_v35  ;;  %v2876_v62 = vld [vmem:[%s4565_s0 + $0x188] sm:$0xff]  ;;  %v2914_v15 = vld [vmem:[%s4565_s0 + $0x240] sm:$0xff]  ;;  %v2921_v25 = vld [vmem:[%s4565_s0 + $0x278] sm:$0xff] }
  0x1d   :  { %3614 = vmatprep.subr.bf16.mxu1 %v3838_v3  ;;  %v2915_v16 = vld [vmem:[%s4565_s0 + $0x248] sm:$0xff] }
  0x1e   :  { %v2919_v22 = vld [vmem:[%s4565_s0 + $0x268] sm:$0xff] }
  0x1f   :  { %v2928_v29 = vld [vmem:[%s4565_s0 + $0x288] sm:$0xff] }
  0x20   :  { %3616 = vmatpush3.bf16.msra.mxu1 %v3615_v38  ;;  %v2889_v38 = vld [vmem:[%s4565_s0 + $0x1c8] sm:$0xff] }
  0x21   :  { %3629 = vmatprep.subr.bf16.mxu1 %v3838_v3  ;;  %v3666_v39 = vpack.c.bf16 %v2889_v38, %v2888_v37  ;;  %v2933_v37 = vld [vmem:[%s4565_s0 + $0x2b0] sm:$0xff]  ;;  %v2934_v38 = vld [vmem:[%s4565_s0 + $0x2b8] sm:$0xff] }
  0x23   :  { %3262 = vmatmul.mubr.msk.f32.vlgmr.msra.gmra.mrb[2].mxu1 %vm33_vm1, %v3947_v28 }
  0x24   :  { %3309 = vmatprep.mubr.msk.f32.mxu1 %vm3839_vm0, %v3840_v10  ;;  %3631 = vmatpush3.bf16.msra.mxu1 %v3630_v42  ;;  %v3669_v42 = vpack.c.bf16 %v2891_v41, %v2890_v40 }
  0x25   :  { %3632 = vmatprep.subr.bf16.mxu1 %v3838_v3 }
  0x28   :  { %3634 = vmatpush3.bf16.msra.mxu1 %v3633_v45  ;;  %v3672_v45 = vpack.c.bf16 %v2893_v44, %v2892_v43 }
  0x29   :  { %3635 = vmatprep.subr.bf16.mxu1 %v3838_v3 }
  0x2c   :  { %3637 = vmatpush3.bf16.msra.mxu1 %v3636_v48  ;;  %v3675_v48 = vpack.c.bf16 %v2895_v47, %v2894_v46  ;;  %v2897_v47 = vld [vmem:[%s4567_s2 + $0x70] sm:$0xff] }
  0x2d   :  { %3638 = vmatprep.subr.bf16.mxu1 %v3838_v3 }
  0x30   :  { %3640 = vmatpush3.bf16.msra.mxu1 %v3639_v51 }
  0x31   :  { %3641 = vmatprep.subr.bf16.mxu1 %v3838_v3 }
  0x33   :  { %3310 = vmatmul.mubr.msk.f32.vlgmr.msra.gmra.mrb[4].mxu1 %vm33_vm1, %v3947_v28 }
  0x34   :  { %3643 = vmatpush3.bf16.msra.mxu1 %v3642_v54  ;;  %3333 = vmatprep.mubr.msk.f32.mxu1 %vm3839_vm0, %v3840_v10 }
  0x35   :  { %3644 = vmatprep.subr.bf16.mxu1 %v3838_v3 }
  0x38   :  { %3646 = vmatpush3.bf16.msra.mxu1 %v3645_v57 }
  0x39   :  { %3647 = vmatprep.subr.bf16.mxu1 %v3838_v3 }
  0x3c   :  { %3649 = vmatpush3.bf16.msra.mxu1 %v3648_v60  ;;  %v2871_v60 = vld [vmem:[%s4567_s2 + $0x50] sm:$0xff] }
  0x3d   :  { %3650 = vmatprep.subr.bf16.mxu1 %v3838_v3 }
  0x40   :  { %3652 = vmatpush3.bf16.msra.mxu1 %v3651_v63  ;;  %v2872_v63 = vld [vmem:[%s4567_s2 + $0x58] sm:$0xff] }
  0x41   :  { %3665 = vmatprep.subr.bf16.mxu1 %v3838_v3 }
  0x43   :  { %3334 = vmatmul.mubr.msk.f32.vlgmr.msra.gmra.mrb[6].mxu1 %vm33_vm1, %v3947_v28 }
  0x44   :  { %3381 = vmatprep.mubr.msk.f32.mxu1 %vm3839_vm0, %v3840_v10  ;;  %3667 = vmatpush3.bf16.msra.mxu1 %v3666_v39  ;;  %v3711_v39 = vpack.c.bf16 %v2934_v38, %v2933_v37 }
  0x45   :  { %3668 = vmatprep.subr.bf16.mxu1 %v3838_v3 }
  0x48   :  { %3670 = vmatpush3.bf16.msra.mxu1 %v3669_v42 }
  0x49   :  { %3671 = vmatprep.subr.bf16.mxu1 %v3838_v3 }
  0x4c   :  { %3673 = vmatpush3.bf16.msra.mxu1 %v3672_v45  ;;  %v2885_v45 = vld [vmem:[%s4567_s2 + $0x68] sm:$0xff] }
  0x4d   :  { %3674 = vmatprep.subr.bf16.mxu1 %v3838_v3 }
  0x50   :  { %3676 = vmatpush3.bf16.msra.mxu1 %v3675_v48  ;;  %v2901_v48 = vld [vmem:[%s4565_s0 + $0x200] sm:$0xff] }
  0x51   :  { %3689 = vmatprep.subr.bf16.mxu1 %v3838_v3 }
  0x53   :  { %3382 = vmatmul.mubr.msk.f32.vlgmr.msra.gmra.mrb[8].mxu1 %vm33_vm1, %v3947_v28 }
  0x54   :  { %3429 = vmatprep.mubr.msk.f32.mxu1 %vm3839_vm0, %v3840_v10 }
  0xe6   :  { %v187_v0 = vpop.f32.mrb[0].mxu1 }
  0xe7   :  { %vm191_vm3 = vcmp.gt.f32.partialorder %v187_v0, 0.0  ;;  %v192_v1 = vmul.f32 0.2, %v187_v0  ;;  %v3234_v2 = vpop.f32.mrb[1].mxu1  ;;  %v103_v4 = vpop.f32.mrb[0].mxu0 }
  0xe8   :  { %vm107_vm4 = vcmp.gt.f32.partialorder %v103_v4, 0.0  ;;  %v108_v5 = vmul.f32 0.2, %v103_v4  ;;  %v3215_v6 = vpop.f32.mrb[1].mxu0  ;;  %v2878_v2 = vld [vmem:[%s4565_s0 + $0x198] sm:$0xff] }
  0xe9   :  { %v193_v7 = vsel %vm191_vm3, %v187_v0, %v192_v1  ;;  %v3654_v0 = vpack.c.bf16 %v2876_v62, %v2875_v61  ;;  %v2877_v1 = vld [vmem:[%s4565_s0 + $0x190] sm:$0xff]  ;;  %v2880_v6 = vld [vmem:[%s4565_s0 + $0x1a8] sm:$0xff] }
  0xea   :  { %3235 = vmatprep.subr.mxu0 %v193_v7  ;;  %v109_v9 = vsel %vm107_vm4, %v103_v4, %v108_v5  ;;  %v3657_v4 = vpack.c.bf16 %v2878_v2, %v2877_v1  ;;  %v2879_v5 = vld [vmem:[%s4565_s0 + $0x1a0] sm:$0xff] }
  0xeb   :  { %3236 = vmatpush3.msra.mxu0 %v193_v7  ;;  %v3660_v7 = vpack.c.bf16 %v2880_v6, %v2879_v5  ;;  %v2953_v2 = vld [vmem:[%s4565_s0 + $0x300] sm:$0xff]  ;;  %v2955_v6 = vld [vmem:[%s4565_s0 + $0x310] sm:$0xff] }
  0xec   :  { %3238 = vmatmul.mubr.msk.f32.vlgmr.msra.gmra.mrb[2].mxu0 %vm197_vm2, %v2818_v8  ;;  %3240 = vmatprep.subr.mxu0 %v109_v9  ;;  %v2881_v8 = vld [vmem:[%s4565_s0 + $0x1b0] sm:$0xff] }
  0xed   :  { %3241 = vmatpush3.msra.mxu0 %v109_v9  ;;  %3242 = vmatprep.mubr.msk.f32.mxu0 %vm197_vm2, %v110_v11  ;;  %v2882_v9 = vld [vmem:[%s4565_s0 + $0x1b8] sm:$0xff] }
  0xee   :  { %v3663_v11 = vpack.c.bf16 %v2882_v9, %v2881_v8  ;;  %v2957_v9 = vld [vmem:[%s4565_s0 + $0x320] sm:$0xff] }
  0xf4   :  { %3243 = vmatmul.mubr.msk.f32.vlgmr.msra.gmra.mrb[2].mxu0 %vm197_vm2, %v111_v12  ;;  %v2884_v12 = vld [vmem:[%s4567_s2 + $0x60] sm:$0xff] }
  0xf5   :  { %3266 = vmatprep.mubr.msk.f32.mxu0 %vm197_vm2, %v2832_v13 }
  0xf6   :  { %v435_v14 = vpop.f32.mrb[2].mxu1 }
  0xf7   :  { %vm439_vm5 = vcmp.gt.f32.partialorder %v435_v14, 0.0  ;;  %v440_v17 = vmul.f32 0.2, %v435_v14  ;;  %v3263_v18 = vpop.f32.mrb[3].mxu1 }
  0xf8   :  { %v2916_v18 = vld [vmem:[%s4565_s0 + $0x250] sm:$0xff] }
  0xf9   :  { %v441_v19 = vsel %vm439_vm5, %v435_v14, %v440_v17  ;;  %v3690_v17 = vpack.c.bf16 %v2915_v16, %v2914_v15  ;;  %v2966_v16 = vld [vmem:[%s4565_s0 + $0x340] sm:$0xff] }
  0xfa   :  { %3264 = vmatprep.subr.mxu0 %v441_v19 }
  0xfb   :  { %3265 = vmatpush3.msra.mxu0 %v441_v19  ;;  %3691 = vmatpush3.bf16.msra.mxu1 %v3690_v17  ;;  %v2917_v19 = vld [vmem:[%s4565_s0 + $0x258] sm:$0xff]  ;;  %v2967_v17 = vld [vmem:[%s4565_s0 + $0x348] sm:$0xff] }
  0xfc   :  { %3617 = vmatprep.subr.bf16.mxu0 %v3838_v3  ;;  %3267 = vmatmul.mubr.msk.f32.vlgmr.msra.gmra.mrb[2].mxu0 %vm197_vm2, %v2833_v20  ;;  %v3693_v20 = vpack.c.bf16 %v2917_v19, %v2916_v18  ;;  %v3738_v18 = vpack.c.bf16 %v2967_v17, %v2966_v16  ;;  %v2968_v19 = vld [vmem:[%s4565_s0 + $0x350] sm:$0xff]  ;;  %v2962_v16 = vld [vmem:[%s4567_s2 + $0xc0] sm:$0xff] }
  0xfd   :  { %3619 = vmatpush3.bf16.msra.mxu0 %v3618_v21  ;;  %3285 = vmatprep.mubr.msk.f32.mxu0 %vm3839_vm0, %v3840_v10  ;;  %v2918_v21 = vld [vmem:[%s4565_s0 + $0x260] sm:$0xff] }
  0xfe   :  { %3620 = vmatprep.subr.bf16.mxu0 %v3838_v3  ;;  %3692 = vmatprep.subr.bf16.mxu1 %v3838_v3  ;;  %v3696_v23 = vpack.c.bf16 %v2919_v22, %v2918_v21  ;;  %v2970_v22 = vld [vmem:[%s4565_s0 + $0x360] sm:$0xff] }
  0xff   :  { %3694 = vmatpush3.bf16.msra.mxu1 %v3693_v20  ;;  %v2969_v20 = vld [vmem:[%s4565_s0 + $0x358] sm:$0xff] }
 0x100   :  { %3695 = vmatprep.subr.bf16.mxu1 %v3838_v3  ;;  %v3741_v21 = vpack.c.bf16 %v2969_v20, %v2968_v19  ;;  %v2963_v19 = vld [vmem:[%s4567_s2 + $0xc8] sm:$0xff]  ;;  %v2975_v20 = vld [vmem:[%s4567_s2 + $0xd0] sm:$0xff] }
 0x101   :  { %3622 = vmatpush3.bf16.msra.mxu0 %v3621_v24  ;;  %v2920_v24 = vld [vmem:[%s4565_s0 + $0x270] sm:$0xff] }
 0x102   :  { %3623 = vmatprep.subr.bf16.mxu0 %v3838_v3  ;;  %v3699_v26 = vpack.c.bf16 %v2921_v25, %v2920_v24  ;;  %v2972_v25 = vld [vmem:[%s4565_s0 + $0x370] sm:$0xff] }
 0x103   :  { %3697 = vmatpush3.bf16.msra.mxu1 %v3696_v23  ;;  %v2971_v23 = vld [vmem:[%s4565_s0 + $0x368] sm:$0xff] }
 0x104   :  { %3698 = vmatprep.subr.bf16.mxu1 %v3838_v3  ;;  %v3744_v24 = vpack.c.bf16 %v2971_v23, %v2970_v22  ;;  %v2980_v22 = vld [vmem:[%s4565_s0 + $0x388] sm:$0xff]  ;;  %v2976_v23 = vld [vmem:[%s4567_s2 + $0xd8] sm:$0xff] }
 0x105   :  { %3625 = vmatpush3.bf16.msra.mxu0 %v3624_v27  ;;  %v2927_v27 = vld [vmem:[%s4565_s0 + $0x280] sm:$0xff] }
 0x106   :  { %3626 = vmatprep.subr.bf16.mxu0 %v3838_v3  ;;  %v771_v32 = vpop.f32.mrb[4].mxu1  ;;  %v3702_v30 = vpack.c.bf16 %v2928_v29, %v2927_v27 }
 0x107   :  { %v3311_v33 = vpop.f32.mrb[5].mxu1  ;;  %v776_v49 = vmul.f32 0.2, %v771_v32  ;;  %vm775_vm7 = vcmp.gt.f32.partialorder %v771_v32, 0.0  ;;  %3700 = vmatpush3.bf16.msra.mxu1 %v3699_v26  ;;  %v2973_v26 = vld [vmem:[%s4565_s0 + $0x378] sm:$0xff] }
 0x108   :  { %3701 = vmatprep.subr.bf16.mxu1 %v3838_v3  ;;  %v3747_v27 = vpack.c.bf16 %v2973_v26, %v2972_v25  ;;  %v2981_v25 = vld [vmem:[%s4565_s0 + $0x390] sm:$0xff]  ;;  %v2982_v26 = vld [vmem:[%s4565_s0 + $0x398] sm:$0xff] }
 0x109   :  { %3628 = vmatpush3.bf16.msra.mxu0 %v3627_v31  ;;  %v777_v57 = vsel %vm775_vm7, %v771_v32, %v776_v49  ;;  %v2929_v31 = vld [vmem:[%s4565_s0 + $0x290] sm:$0xff]  ;;  %v2930_v32 = vld [vmem:[%s4565_s0 + $0x298] sm:$0xff]  ;;  %v2902_v49 = vld [vmem:[%s4565_s0 + $0x208] sm:$0xff] }
 0x10a   :  { %3430 = vmatmul.mubr.msk.f32.vlgmr.msra.gmra.mrb[10].mxu1 %vm33_vm1, %v3947_v28  ;;  %v3705_v33 = vpack.c.bf16 %v2930_v32, %v2929_v31 }
 0x10b   :  { %3703 = vmatpush3.bf16.msra.mxu1 %v3702_v30  ;;  %3453 = vmatprep.mubr.msk.f32.mxu1 %vm3839_vm0, %v3840_v10 }
 0x10c   :  { %3286 = vmatmul.mubr.msk.f32.vlgmr.msra.gmra.mrb[4].mxu0 %vm33_vm1, %v3947_v28  ;;  %3704 = vmatprep.subr.bf16.mxu1 %v3838_v3 }
 0x10d   :  { %3290 = vmatprep.mubr.msk.f32.mxu0 %vm197_vm2, %v2845_v34  ;;  %v2931_v34 = vld [vmem:[%s4565_s0 + $0x2a0] sm:$0xff] }
 0x10f   :  { %3706 = vmatpush3.bf16.msra.mxu1 %v3705_v33 }
 0x110   :  { %3707 = vmatprep.subr.bf16.mxu1 %v3838_v3 }
 0x116   :  { %v939_v35 = vpop.f32.mrb[6].mxu1 }
 0x117   :  { %v3335_v36 = vpop.f32.mrb[7].mxu1  ;;  %v944_v53 = vmul.f32 0.2, %v939_v35  ;;  %vm943_vm8 = vcmp.gt.f32.partialorder %v939_v35, 0.0 }
 0x119   :  { %v945_v58 = vsel %vm943_vm8, %v939_v35, %v944_v53  ;;  %v2932_v35 = vld [vmem:[%s4565_s0 + $0x2a8] sm:$0xff]  ;;  %v2904_v53 = vld [vmem:[%s4565_s0 + $0x218] sm:$0xff] }
 0x11a   :  { %v3708_v36 = vpack.c.bf16 %v2932_v35, %v2931_v34  ;;  %v2911_v35 = vld [vmem:[%s4567_s2 + $0x88] sm:$0xff] }
 0x11c   :  { %3709 = vmatpush3.bf16.msra.mxu1 %v3708_v36  ;;  %v2923_v36 = vld [vmem:[%s4567_s2 + $0x90] sm:$0xff] }
 0x11d   :  { %3710 = vmatprep.subr.bf16.mxu1 %v3838_v3 }
 0x120   :  { %3712 = vmatpush3.bf16.msra.mxu1 %v3711_v39  ;;  %v2924_v39 = vld [vmem:[%s4567_s2 + $0x98] sm:$0xff] }
 0x121   :  { %3725 = vmatprep.subr.bf16.mxu1 %v3838_v3 }
 0x123   :  { %3454 = vmatmul.mubr.msk.f32.vlgmr.msra.gmra.mrb[12].mxu1 %vm33_vm1, %v3947_v28 }
 0x124   :  { %3501 = vmatprep.mubr.msk.f32.mxu1 %vm3839_vm0, %v3840_v10 }
 0x126   :  { %v1275_v13 = vpop.f32.mrb[8].mxu1 }
 0x127   :  { %v3383_v14 = vpop.f32.mrb[9].mxu1  ;;  %v1280_v40 = vmul.f32 0.2, %v1275_v13  ;;  %vm1279_vm9 = vcmp.gt.f32.partialorder %v1275_v13, 0.0 }
 0x128   :  { %v2960_v14 = vld [vmem:[%s4565_s0 + $0x338] sm:$0xff] }
 0x129   :  { %v1281_v46 = vsel %vm1279_vm9, %v1275_v13, %v1280_v40  ;;  %v2959_v13 = vld [vmem:[%s4565_s0 + $0x330] sm:$0xff]  ;;  %v2936_v40 = vld [vmem:[%s4567_s2 + $0xa0] sm:$0xff] }
 0x12a   :  { %v3735_v15 = vpack.c.bf16 %v2960_v14, %v2959_v13 }
 0x1dd   :  { %v4302_v61 = vpop.f32.mrb[10].mxu1 }
 0x1de   :  { %v3431_v62 = vpop.f32.mrb[11].mxu1  ;;  %v1616_v29 = vmul.f32 0.2, %v4302_v61  ;;  %vm1615_vm12 = vcmp.gt.f32.partialorder %v4302_v61, 0.0 }
 0x1df   :  { %v603_v50 = vpop.f32.mrb[4].mxu0  ;;  %v2994_v62 = vld [vmem:[%s4565_s0 + $0x3d0] sm:$0xff] }
 0x1e0   :  { %vm607_vm6 = vcmp.gt.f32.partialorder %v603_v50, 0.0  ;;  %v608_v51 = vmul.f32 0.2, %v603_v50  ;;  %v3287_v52 = vpop.f32.mrb[5].mxu0  ;;  %v1617_v37 = vsel %vm1615_vm12, %v4302_v61, %v1616_v29  ;;  %v2983_v29 = vld [vmem:[%s4565_s0 + $0x3a0] sm:$0xff] }
 0x1e1   :  { %v2903_v52 = vld [vmem:[%s4565_s0 + $0x210] sm:$0xff] }
 0x1e2   :  { %v609_v54 = vsel %vm607_vm6, %v603_v50, %v608_v51  ;;  %v2898_v50 = vld [vmem:[%s4567_s2 + $0x78] sm:$0xff]  ;;  %v3678_v51 = vpack.c.bf16 %v2902_v49, %v2901_v48  ;;  %v2944_v48 = vld [vmem:[%s4565_s0 + $0x2e0] sm:$0xff]  ;;  %v2945_v49 = vld [vmem:[%s4565_s0 + $0x2e8] sm:$0xff]  ;;  %vm2791_vm6 = vcmask 0  }
 0x1e3   :  { %3288 = vmatprep.subr.mxu0 %v609_v54 }
 0x1e4   :  { %3289 = vmatpush3.msra.mxu0 %v609_v54  ;;  %v3681_v54 = vpack.c.bf16 %v2904_v53, %v2903_v52  ;;  %v2947_v52 = vld [vmem:[%s4565_s0 + $0x2f8] sm:$0xff] }
 0x1e5   :  { %3291 = vmatmul.mubr.msk.f32.vlgmr.msra.gmra.mrb[2].mxu0 %vm197_vm2, %v2846_v55  ;;  %3312 = vmatprep.subr.mxu0 %v777_v57  ;;  %v2905_v55 = vld [vmem:[%s4565_s0 + $0x220] sm:$0xff] }
 0x1e6   :  { %3313 = vmatpush3.msra.mxu0 %v777_v57  ;;  %3314 = vmatprep.mubr.msk.f32.mxu0 %vm197_vm2, %v2858_v56  ;;  %v2906_v56 = vld [vmem:[%s4565_s0 + $0x228] sm:$0xff] }
 0x1e7   :  { %3336 = vmatprep.subr.mxu0 %v945_v58  ;;  %v3684_v57 = vpack.c.bf16 %v2906_v56, %v2905_v55  ;;  %v2949_v56 = vld [vmem:[%s4567_s2 + $0xb0] sm:$0xff] }
 0x1ed   :  { %3315 = vmatmul.mubr.msk.f32.vlgmr.msra.gmra.mrb[2].mxu0 %vm197_vm2, %v2859_v59  ;;  %v2908_v59 = vld [vmem:[%s4565_s0 + $0x238] sm:$0xff] }
 0x1ee   :  { %3337 = vmatpush3.msra.mxu0 %v945_v58  ;;  %3338 = vmatprep.mubr.msk.f32.mxu0 %vm197_vm2, %v2871_v60  ;;  %v2907_v58 = vld [vmem:[%s4565_s0 + $0x230] sm:$0xff] }
 0x1ef   :  { %3653 = vmatprep.subr.bf16.mxu0 %v3838_v3  ;;  %v3687_v60 = vpack.c.bf16 %v2908_v59, %v2907_v58  ;;  %v2992_v59 = vld [vmem:[%s4565_s0 + $0x3c0] sm:$0xff] }
 0x1f5   :  { %3339 = vmatmul.mubr.msk.f32.vlgmr.msra.gmra.mrb[2].mxu0 %vm197_vm2, %v2872_v63  ;;  %v2910_v63 = vld [vmem:[%s4567_s2 + $0x80] sm:$0xff] }
 0x1f6   :  { %3655 = vmatpush3.bf16.msra.mxu0 %v3654_v0  ;;  %3357 = vmatprep.mubr.msk.f32.mxu0 %vm3839_vm0, %v3840_v10  ;;  %v1779_v0 = vpop.f32.mrb[12].mxu1 }
 0x1f7   :  { %3656 = vmatprep.subr.bf16.mxu0 %v3838_v3  ;;  %v3455_v1 = vpop.f32.mrb[13].mxu1  ;;  %v1784_v33 = vmul.f32 0.2, %v1779_v0  ;;  %vm1783_vm13 = vcmp.gt.f32.partialorder %v1779_v0, 0.0 }
 0x1f8   :  { %v2996_v1 = vld [vmem:[%s4565_s0 + $0x3e0] sm:$0xff] }
 0x1f9   :  { %v1785_v38 = vsel %vm1783_vm13, %v1779_v0, %v1784_v33 }
 0x1fa   :  { %3658 = vmatpush3.bf16.msra.mxu0 %v3657_v4  ;;  %v2954_v4 = vld [vmem:[%s4565_s0 + $0x308] sm:$0xff] }
 0x1fb   :  { %3659 = vmatprep.subr.bf16.mxu0 %v3838_v3  ;;  %v3726_v5 = vpack.c.bf16 %v2954_v4, %v2953_v2  ;;  %v2997_v2 = vld [vmem:[%s4565_s0 + $0x3e8] sm:$0xff] }
 0x1fc   :  { %v3768_v4 = vpack.c.bf16 %v2997_v2, %v2996_v1 }
 0x1fd   :  { %3727 = vmatpush3.bf16.msra.mxu1 %v3726_v5  ;;  %v2998_v5 = vld [vmem:[%s4565_s0 + $0x3f0] sm:$0xff] }
 0x1fe   :  { %3661 = vmatpush3.bf16.msra.mxu0 %v3660_v7  ;;  %3728 = vmatprep.subr.bf16.mxu1 %v3838_v3  ;;  %v2956_v7 = vld [vmem:[%s4565_s0 + $0x318] sm:$0xff] }
 0x1ff   :  { %3662 = vmatprep.subr.bf16.mxu0 %v3838_v3  ;;  %v3729_v8 = vpack.c.bf16 %v2956_v7, %v2955_v6  ;;  %v2999_v6 = vld [vmem:[%s4565_s0 + $0x3f8] sm:$0xff] }
 0x200   :  { %v3771_v7 = vpack.c.bf16 %v2999_v6, %v2998_v5 }
 0x201   :  { %3730 = vmatpush3.bf16.msra.mxu1 %v3729_v8 }
 0x202   :  { %3664 = vmatpush3.bf16.msra.mxu0 %v3663_v11  ;;  %3731 = vmatprep.subr.bf16.mxu1 %v3838_v3  ;;  %v2958_v11 = vld [vmem:[%s4565_s0 + $0x328] sm:$0xff] }
 0x205   :  { %3358 = vmatmul.mubr.msk.f32.vlgmr.msra.gmra.mrb[6].mxu0 %vm33_vm1, %v3947_v28 }
 0x206   :  { %3362 = vmatprep.mubr.msk.f32.mxu0 %vm197_vm2, %v2884_v12  ;;  %v3732_v12 = vpack.c.bf16 %v2958_v11, %v2957_v9 }
 0x208   :  { %3733 = vmatpush3.bf16.msra.mxu1 %v3732_v12 }
 0x209   :  { %3734 = vmatprep.subr.bf16.mxu1 %v3838_v3 }
 0x20c   :  { %3736 = vmatpush3.bf16.msra.mxu1 %v3735_v15  ;;  %v2950_v15 = vld [vmem:[%s4567_s2 + $0xb8] sm:$0xff] }
 0x20d   :  { %3737 = vmatprep.subr.bf16.mxu1 %v3838_v3 }
 0x20f   :  { %3502 = vmatmul.mubr.msk.f32.vlgmr.msra.gmra.mrb[14].mxu1 %vm33_vm1, %v3947_v28 }
 0x210   :  { %3739 = vmatpush3.bf16.msra.mxu1 %v3738_v18  ;;  %3525 = vmatprep.mubr.msk.f32.mxu1 %vm3839_vm0, %v3840_v10 }
 0x211   :  { %3740 = vmatprep.subr.bf16.mxu1 %v3838_v3 }
 0x214   :  { %3742 = vmatpush3.bf16.msra.mxu1 %v3741_v21  ;;  %v2979_v21 = vld [vmem:[%s4565_s0 + $0x380] sm:$0xff] }
 0x215   :  { %3743 = vmatprep.subr.bf16.mxu1 %v3838_v3 }
 0x218   :  { %3745 = vmatpush3.bf16.msra.mxu1 %v3744_v24  ;;  %v3750_v24 = vpack.c.bf16 %v2980_v22, %v2979_v21  ;;  %v2774_v22 = vld [vmem:[%s4570_s5] sm:$0xff] }
 0x219   :  { %3746 = vmatprep.subr.bf16.mxu1 %v3838_v3 }
 0x21c   :  { %3748 = vmatpush3.bf16.msra.mxu1 %v3747_v27  ;;  %v3753_v27 = vpack.c.bf16 %v2982_v26, %v2981_v25 }
 0x21d   :  { %3761 = vmatprep.subr.bf16.mxu1 %v3838_v3 }
 0x21f   :  { %3526 = vmatmul.mubr.msk.f32.vlgmr.msra.gmra.mrb[16].mxu1 %vm33_vm1, %v3947_v28 }
 0x220   :  { %3573 = vmatprep.mubr.msk.f32.mxu1 %vm3839_vm0, %v3840_v10 }
 0x2d8   :  { %v1107_v41 = vpop.f32.mrb[6].mxu0 }
 0x2d9   :  { %vm1111_vm10 = vcmp.gt.f32.partialorder %v1107_v41, 0.0  ;;  %v1112_v42 = vmul.f32 0.2, %v1107_v41  ;;  %v3359_v43 = vpop.f32.mrb[7].mxu0 }
 0x2da   :  { %v2937_v43 = vld [vmem:[%s4567_s2 + $0xa8] sm:$0xff] }
 0x2db   :  { %v1113_v44 = vsel %vm1111_vm10, %v1107_v41, %v1112_v42  ;;  %v2940_v41 = vld [vmem:[%s4565_s0 + $0x2c0] sm:$0xff]  ;;  %v2941_v42 = vld [vmem:[%s4565_s0 + $0x2c8] sm:$0xff] }
 0x2dc   :  { %3360 = vmatprep.subr.mxu0 %v1113_v44 }
 0x2dd   :  { %3361 = vmatpush3.msra.mxu0 %v1113_v44  ;;  %v3714_v44 = vpack.c.bf16 %v2941_v42, %v2940_v41  ;;  %v3001_v42 = vld [vmem:[%s4567_s2 + $0xf0] sm:$0xff] }
 0x2de   :  { %3363 = vmatmul.mubr.msk.f32.vlgmr.msra.gmra.mrb[2].mxu0 %vm197_vm2, %v2885_v45  ;;  %3384 = vmatprep.subr.mxu0 %v1281_v46  ;;  %v2942_v45 = vld [vmem:[%s4565_s0 + $0x2d0] sm:$0xff] }
 0x2df   :  { %3385 = vmatpush3.msra.mxu0 %v1281_v46  ;;  %3386 = vmatprep.mubr.msk.f32.mxu0 %vm197_vm2, %v2897_v47  ;;  %v2943_v46 = vld [vmem:[%s4565_s0 + $0x2d8] sm:$0xff] }
 0x2e0   :  { %3677 = vmatprep.subr.bf16.mxu0 %v3838_v3  ;;  %v3717_v47 = vpack.c.bf16 %v2943_v46, %v2942_v45  ;;  %v3841_v45 = vmov 0   ;;  %v2754_v46 = vld [vmem:[%s4569_s4] sm:$0xff] }
 0x2e1   :  { %3809 = vset.pattern.permute.xlu1 %v3841_v45  ;;  %3808 = vset.pattern.permute.xlu0 %v3841_v45 }
 0x2e6   :  { %3387 = vmatmul.mubr.msk.f32.vlgmr.msra.gmra.mrb[2].mxu0 %vm197_vm2, %v2898_v50  ;;  %v3720_v50 = vpack.c.bf16 %v2945_v49, %v2944_v48 }
 0x2e7   :  { %3679 = vmatpush3.bf16.msra.mxu0 %v3678_v51  ;;  %3405 = vmatprep.mubr.msk.f32.mxu0 %vm3839_vm0, %v3840_v10  ;;  %v2946_v51 = vld [vmem:[%s4565_s0 + $0x2f0] sm:$0xff] }
 0x2e8   :  { %3680 = vmatprep.subr.bf16.mxu0 %v3838_v3  ;;  %v3723_v53 = vpack.c.bf16 %v2947_v52, %v2946_v51  ;;  %v2740_v51 = vld [vmem:[%s4568_s3] sm:$0xff] }
 0x2eb   :  { %3682 = vmatpush3.bf16.msra.mxu0 %v3681_v54  ;;  %v2115_v54 = vpop.f32.mrb[14].mxu1 }
 0x2ec   :  { %3683 = vmatprep.subr.bf16.mxu0 %v3838_v3  ;;  %v3503_v55 = vpop.f32.mrb[15].mxu1  ;;  %v2120_v8 = vmul.f32 0.2, %v2115_v54  ;;  %vm2119_vm15 = vcmp.gt.f32.partialorder %v2115_v54, 0.0 }
 0x2ee   :  { %v2121_v17 = vsel %vm2119_vm15, %v2115_v54, %v2120_v8 }
 0x2ef   :  { %3685 = vmatpush3.bf16.msra.mxu0 %v3684_v57 }
 0x2f0   :  { %3686 = vmatprep.subr.bf16.mxu0 %v3838_v3 }
 0x2f2   :  { %v2283_v57 = vpop.f32.mrb[16].mxu1 }
 0x2f3   :  { %3688 = vmatpush3.bf16.msra.mxu0 %v3687_v60  ;;  %v3527_v58 = vpop.f32.mrb[17].mxu1  ;;  %v2993_v60 = vld [vmem:[%s4565_s0 + $0x3c8] sm:$0xff]  ;;  %v2288_v13 = vmul.f32 0.2, %v2283_v57  ;;  %vm2287_vm3 = vcmp.gt.f32.partialorder %v2283_v57, 0.0 }
 0x2f4   :  { %v3762_v61 = vpack.c.bf16 %v2993_v60, %v2992_v59 }
 0x2f5   :  { %v2289_v18 = vsel %vm2287_vm3, %v2283_v57, %v2288_v13 }
 0x2f6   :  { %3406 = vmatmul.mubr.msk.f32.vlgmr.msra.gmra.mrb[8].mxu0 %vm33_vm1, %v3947_v28  ;;  %3763 = vmatpush3.bf16.msra.mxu1 %v3762_v61 }
 0x2f7   :  { %3410 = vmatprep.mubr.msk.f32.mxu0 %vm197_vm2, %v2910_v63  ;;  %3764 = vmatprep.subr.bf16.mxu1 %v3838_v3  ;;  %v2995_v63 = vld [vmem:[%s4565_s0 + $0x3d8] sm:$0xff] }
 0x2f8   :  { %v3765_v0 = vpack.c.bf16 %v2995_v63, %v2994_v62  ;;  %v2755_v62 = vld [vmem:[%s4569_s4 + $0x8] sm:$0xff] }
 0x2fa   :  { %3766 = vmatpush3.bf16.msra.mxu1 %v3765_v0 }
 0x2fb   :  { %3767 = vmatprep.subr.bf16.mxu1 %v3838_v3 }
 0x2fe   :  { %3769 = vmatpush3.bf16.msra.mxu1 %v3768_v4 }
 0x2ff   :  { %3770 = vmatprep.subr.bf16.mxu1 %v3838_v3 }
 0x302   :  { %3772 = vmatpush3.bf16.msra.mxu1 %v3771_v7 }
 0x305   :  { %3574 = vmatmul.mubr.msk.f32.vlgmr.msra.gmra.mrb[18].mxu1 %vm33_vm1, %v3947_v28 }
 0x3c9   :  { %v1443_v30 = vpop.f32.mrb[8].mxu0 }
 0x3ca   :  { %vm1447_vm11 = vcmp.gt.f32.partialorder %v1443_v30, 0.0  ;;  %v1448_v31 = vmul.f32 0.2, %v1443_v30  ;;  %v3407_v32 = vpop.f32.mrb[9].mxu0 }
 0x3cb   :  { %v2985_v32 = vld [vmem:[%s4565_s0 + $0x3b0] sm:$0xff] }
 0x3cc   :  { %v1449_v34 = vsel %vm1447_vm11, %v1443_v30, %v1448_v31  ;;  %v2984_v30 = vld [vmem:[%s4565_s0 + $0x3a8] sm:$0xff] }
 0x3cd   :  { %3408 = vmatprep.subr.mxu0 %v1449_v34  ;;  %v3756_v31 = vpack.c.bf16 %v2984_v30, %v2983_v29 }
 0x3ce   :  { %3409 = vmatpush3.msra.mxu0 %v1449_v34  ;;  %v2988_v34 = vld [vmem:[%s4567_s2 + $0xe0] sm:$0xff] }
 0x3cf   :  { %3411 = vmatmul.mubr.msk.f32.vlgmr.msra.gmra.mrb[2].mxu0 %vm197_vm2, %v2911_v35  ;;  %3432 = vmatprep.subr.mxu0 %v1617_v37 }
 0x3d0   :  { %3433 = vmatpush3.msra.mxu0 %v1617_v37  ;;  %3434 = vmatprep.mubr.msk.f32.mxu0 %vm197_vm2, %v2923_v36 }
 0x3d1   :  { %3456 = vmatprep.subr.mxu0 %v1785_v38 }
 0x3d7   :  { %3435 = vmatmul.mubr.msk.f32.vlgmr.msra.gmra.mrb[2].mxu0 %vm197_vm2, %v2924_v39 }
 0x3d8   :  { %3457 = vmatpush3.msra.mxu0 %v1785_v38  ;;  %3458 = vmatprep.mubr.msk.f32.mxu0 %vm197_vm2, %v2936_v40  ;;  %v2619_v35 = vpop.f32.mrb[18].mxu1 }
 0x3d9   :  { %3713 = vmatprep.subr.bf16.mxu0 %v3838_v3  ;;  %v3575_v36 = vpop.f32.mrb[19].mxu1  ;;  %v2624_v37 = vmul.f32 0.2, %v2619_v35 }
 0x3df   :  { %3459 = vmatmul.mubr.msk.f32.vlgmr.msra.gmra.mrb[2].mxu0 %vm197_vm2, %v2937_v43  ;;  %v3002_v43 = vld [vmem:[%s4567_s2 + $0xf8] sm:$0xff] }
 0x3e0   :  { %3715 = vmatpush3.bf16.msra.mxu0 %v3714_v44  ;;  %3477 = vmatprep.mubr.msk.f32.mxu0 %vm3839_vm0, %v3840_v10  ;;  %v2741_v44 = vld [vmem:[%s4568_s3 + $0x8] sm:$0xff] }
 0x3e1   :  { %3716 = vmatprep.subr.bf16.mxu0 %v3838_v3  ;;  %2749 = vperm.xlu1 %3809, %v2741_v44  }
 0x3e4   :  { %3718 = vmatpush3.bf16.msra.mxu0 %v3717_v47 }
 0x3e5   :  { %3719 = vmatprep.subr.bf16.mxu0 %v3838_v3  ;;  %2758 = vperm.xlu1 %3809, %v2754_v46  }
 0x3e8   :  { %3721 = vmatpush3.bf16.msra.mxu0 %v3720_v50 }
 0x3e9   :  { %3722 = vmatprep.subr.bf16.mxu0 %v3838_v3 }
 0x3ec   :  { %3724 = vmatpush3.bf16.msra.mxu0 %v3723_v53 }
 0x3ef   :  { %3478 = vmatmul.mubr.msk.f32.vlgmr.msra.gmra.mrb[10].mxu0 %vm33_vm1, %v3947_v28 }
 0x3f0   :  { %3482 = vmatprep.mubr.msk.f32.mxu0 %vm197_vm2, %v2949_v56 }
 0x460   :  { %v2750_v63 = vpop.permute.xlu1 %2749 }
 0x464   :  { %v2759_v0 = vpop.permute.xlu1 %2758 }
 0x4c2   :  { %v1947_v9 = vpop.f32.mrb[10].mxu0 }
 0x4c3   :  { %vm1951_vm14 = vcmp.gt.f32.partialorder %v1947_v9, 0.0  ;;  %v1952_v11 = vmul.f32 0.2, %v1947_v9  ;;  %v3479_v12 = vpop.f32.mrb[11].mxu0 }
 0x4c5   :  { %v1953_v14 = vsel %vm1951_vm14, %v1947_v9, %v1952_v11 }
 0x4c6   :  { %3480 = vmatprep.subr.mxu0 %v1953_v14 }
 0x4c7   :  { %3481 = vmatpush3.msra.mxu0 %v1953_v14 }
 0x4c8   :  { %3483 = vmatmul.mubr.msk.f32.vlgmr.msra.gmra.mrb[2].mxu0 %vm197_vm2, %v2950_v15  ;;  %3504 = vmatprep.subr.mxu0 %v2121_v17 }
 0x4c9   :  { %3505 = vmatpush3.msra.mxu0 %v2121_v17  ;;  %3506 = vmatprep.mubr.msk.f32.mxu0 %vm197_vm2, %v2962_v16 }
 0x4ca   :  { %3528 = vmatprep.subr.mxu0 %v2289_v18 }
 0x4d0   :  { %3507 = vmatmul.mubr.msk.f32.vlgmr.msra.gmra.mrb[2].mxu0 %vm197_vm2, %v2963_v19  ;;  %v2775_v19 = vld [vmem:[%s4570_s5 + $0x8] sm:$0xff]  ;;  %s3842_s5 = smov [#allocation2]  }
 0x4d1   :  { %3529 = vmatpush3.msra.mxu0 %v2289_v18  ;;  %3530 = vmatprep.mubr.msk.f32.mxu0 %vm197_vm2, %v2975_v20  ;;  %s2799_s27 = sshll.u32 %s3842_s5, 4  ;;  %s2800_s27 = int_to_ptr.vmem [resolvable:$true] %s2799_s27 }
 0x4d2   :  { %3749 = vmatprep.subr.bf16.mxu0 %v3838_v3  ;;  %s3814_s28 = scalar_lea.vmem %s2800_s27, 16  ;;  %s3818_s29 = scalar_lea.vmem %s2800_s27, 32 }
 0x4d3   :  { %p3815_p0 = scmp.ne.s32.totalorder %s2800_s27, %s3814_s28  ;;  %p3819_p1 = scmp.lt.s32.totalorder %s2800_s27, %s2800_s27 }
 0x4d4   :  { %p3820_p2 = scmp.lt.s32.totalorder %s3818_s29, %s3814_s28 }
 0x4d6   :  { %p3821_p3 = por %p3820_p2, %p3819_p1 }
 0x4d8   :  { %3531 = vmatmul.mubr.msk.f32.vlgmr.msra.gmra.mrb[2].mxu0 %vm197_vm2, %v2976_v23  ;;  %p3822_p4 = pnand %p3821_p3, %p3815_p0 }
 0x4d9   :  { %3751 = vmatpush3.bf16.msra.mxu0 %v3750_v24  ;;  %3549 = vmatprep.mubr.msk.f32.mxu0 %vm3839_vm0, %v3840_v10  ;;  %v2986_v10 = vld [vmem:[%s4565_s0 + $0x3b8] sm:$0xff]  ;;  %vm2623_vm0 = vcmp.gt.f32.partialorder %v2619_v35, 0.0 }
 0x4da   :  { %3752 = vmatprep.subr.bf16.mxu0 %v3838_v3  ;;  %v3759_v33 = vpack.c.bf16 %v2986_v10, %v2985_v32 }
 0x4dd   :  { %3754 = vmatpush3.bf16.msra.mxu0 %v3753_v27 }
 0x4de   :  { %3755 = vmatprep.subr.bf16.mxu0 %v3838_v3 }
 0x4e1   :  { %3757 = vmatpush3.bf16.msra.mxu0 %v3756_v31 }
 0x4e2   :  { %3758 = vmatprep.subr.bf16.mxu0 %v3838_v3  ;;  %v2989_v3 = vld [vmem:[%s4567_s2 + $0xe8] sm:$0xff] }
 0x4e5   :  { %3760 = vmatpush3.bf16.msra.mxu0 %v3759_v33 }
 0x4e8   :  { %3550 = vmatmul.mubr.msk.f32.vlgmr.msra.gmra.mrb[12].mxu0 %vm33_vm1, %v3947_v28  ;;  %v2625_v28 = vsel %vm2623_vm0, %v2619_v35, %v2624_v37  ;;  %vm2712_vm1 = vcmask 261120  }
 0x4e9   :  { %3554 = vmatprep.mubr.msk.f32.mxu0 %vm197_vm2, %v2988_v34 }
 0x5bb   :  { %v2451_v38 = vpop.f32.mrb[12].mxu0 }
 0x5bc   :  { %vm2455_vm4 = vcmp.gt.f32.partialorder %v2451_v38, 0.0  ;;  %v2456_v39 = vmul.f32 0.2, %v2451_v38  ;;  %v3551_v40 = vpop.f32.mrb[13].mxu0 }
 0x5be   :  { %v2457_v41 = vsel %vm2455_vm4, %v2451_v38, %v2456_v39 }
 0x5bf   :  { %3552 = vmatprep.subr.mxu0 %v2457_v41 }
 0x5c0   :  { %3553 = vmatpush3.msra.mxu0 %v2457_v41 }
 0x5c1   :  { %3555 = vmatmul.mubr.msk.f32.vlgmr.msra.gmra.mrb[2].mxu0 %vm197_vm2, %v2989_v3  ;;  %3576 = vmatprep.subr.mxu0 %v2625_v28 }
 0x5c2   :  { %3577 = vmatpush3.msra.mxu0 %v2625_v28  ;;  %3578 = vmatprep.mubr.msk.f32.mxu0 %vm197_vm2, %v3001_v42 }
 0x5c9   :  { %3579 = vmatmul.mubr.msk.f32.vlgmr.msra.gmra.mrb[2].mxu0 %vm197_vm2, %v3002_v43 }
 0x69c   :  { %v3580_v47 = vpop.f32.mrb[2].mxu0 }
 0x69d   :  { %v2701_v48 = vpop.f32.mrb[3].mxu0  ;;  %v2716_v50 = vsel %vm2712_vm1, %v3580_v47, 0.0 }
 0x69e   :  { %v2713_v49 = vsel %vm2712_vm1, %v2701_v48, 0.0 }
 0x69f   :  { %2714 = vadd.xlane.f32.xlu0 %v2713_v49 }
 0x6a3   :  { %2717 = vadd.xlane.f32.xlu0 %v2716_v50 }
 0x6b9   :  { %2744 = vperm.xlu0 %3808, %v2740_v51  }
 0x72c   :  { %v2715_v52 = vpop.xlane.xlu0 %2714 }
 0x72d   :  { %v2720_v53 = vmul.f32 0.03125, %v2715_v52 }
 0x72f   :  { %v2722_v56 = vsub.f32 %v2701_v48, %v2720_v53 }
 0x730   :  { %v2718_v54 = vpop.xlane.xlu0 %2717 }
 0x731   :  { %v2721_v55 = vmul.f32 0.03125, %v2718_v54  ;;  %v2724_v60 = vmul.f32 %v2722_v56, %v2722_v56 }
 0x733   :  { %v2723_v57 = vsub.f32 %v3580_v47, %v2721_v55  ;;  %v2726_v61 = vsel %vm2712_vm1, %v2724_v60, 0.0 }
 0x735   :  { %v2725_v58 = vmul.f32 %v2723_v57, %v2723_v57 }
 0x737   :  { %v2729_v59 = vsel %vm2712_vm1, %v2725_v58, 0.0 }
 0x738   :  { %2730 = vadd.xlane.f32.xlu1 %v2729_v59  ;;  %v2745_v14 = vpop.permute.xlu0 %2744 }
 0x73c   :  { %2727 = vadd.xlane.f32.xlu1 %v2726_v61 }
 0x74d   :  { %2763 = vperm.xlu1 %3809, %v2755_v62  }
 0x7c5   :  { %v2731_v1 = vpop.xlane.xlu1 %2730 }
 0x7c6   :  { %v2733_v2 = vmul.f32 0.03125, %v2731_v1 }
 0x7c8   :  { %v2735_v4 = vadd.f32 1e-05, %v2733_v2 }
 0x7c9   :  { %v2728_v5 = vpop.xlane.xlu1 %2727 }
 0x7ca   :  { %3810 = vrsqrt.f32 %v2735_v4  ;;  %v2732_v6 = vmul.f32 0.03125, %v2728_v5 }
 0x7cc   :  { %v2734_v7 = vadd.f32 1e-05, %v2732_v6 }
 0x7cd   :  { %v2764_v13 = vpop.permute.xlu1 %2763 }
 0x7ce   :  { %3812 = vrsqrt.f32 %v2734_v7 }
 0x7d4   :  { %v3811_v8 = vpop.eup %3810 }
 0x7d5   :  { %v2739_v9 = vmul.f32 %v3811_v8, %v2723_v57 }
 0x7d7   :  { %v2753_v11 = vmul.f32 %v2750_v63, %v2739_v9 }
 0x7d8   :  { %v3813_v12 = vpop.eup %3812 }
 0x7d9   :  { %v2767_v15 = vadd.f32 %v2764_v13, %v2753_v11  ;;  %v2738_v16 = vmul.f32 %v3813_v12, %v2722_v56 }
 0x7db   :  { %vm2769_vm2 = vcmp.gt.f32.partialorder %v2767_v15, 0.0  ;;  %v2771_v17 = vmul.f32 0.2, %v2767_v15  ;;  %v2752_v18 = vmul.f32 %v2745_v14, %v2738_v16 }
 0x7dd   :  { %v2773_v20 = vsel %vm2769_vm2, %v2767_v15, %v2771_v17  ;;  %v2766_v21 = vadd.f32 %v2759_v0, %v2752_v18 }
 0x7de   :  { %v2777_v24 = vmul.f32 %v2775_v19, %v2773_v20 }
 0x7df   :  { %vm2768_vm5 = vcmp.gt.f32.partialorder %v2766_v21, 0.0  ;;  %v2770_v23 = vmul.f32 0.2, %v2766_v21 }
 0x7e0   :  { %v2779_v27 = vsel %vm2712_vm1, %v2777_v24, 0.0 }
 0x7e1   :  { %v2772_v25 = vsel %vm2768_vm5, %v2766_v21, %v2770_v23 }
 0x7e2   :  { %v2776_v26 = vmul.f32 %v2774_v22, %v2772_v25 }
 0x7e4   :  { %v2778_v29 = vsel %vm2712_vm1, %v2776_v26, 0.0 }
 0x7e5   :  { %v2780_v30 = vadd.f32 %v2779_v27, %v2778_v29 }
 0x7e7   :  { %v2781_v31 = vrot.slane %v2780_v30, 4 }
 0x7e9   :  { %v2782_v32 = vadd.f32 %v2781_v31, %v2780_v30 }
 0x7eb   :  { %v2783_v10 = vrot.slane %v2782_v32, 2 }
 0x7ed   :  { %v2784_v33 = vadd.f32 %v2783_v10, %v2782_v32 }
 0x7ef   :  { %v2785_v34 = vrot.slane %v2784_v33, 1 }
 0x7f1   :  { %v2786_v35 = vadd.f32 %v2785_v34, %v2784_v33 }
 0x7f3   :  { %v2787_v36 = vsel %vm2712_vm1, %v2786_v35, 0.0 }
 0x7f4   :  { %2788 = vadd.xlane.f32.xlu1 %v2787_v36 }
 0x881   :  { %v2789_v37 = vpop.xlane.xlu1 %2788 }
 0x882   :  { %v2790_v38 = vmul.f32 0.5, %v2789_v37 }
 0x884   :  { %2792 = vst.msk [vmem:[#allocation2] sm:$0x1] %vm2791_vm6, %v2790_v38 }
 0x885   :  { %3825 = shalt.err (!%p3822_p4)
}
 0x886   :  { %s3826_s8 = scalar_lea.hbm %s4571_s6, 16 }
 0x887   :  { %p3827_p5 = scmp.ne.s32.totalorder %s4571_s6, %s3826_s8  ;;  %p3830_p6 = scmp.lt.u32.totalorder %s3826_s8, %s4571_s6 }
 0x889   :  { %p3832_p7 = pnand %p3830_p6, %p3827_p5 }
 0x88b   :  { %3835 = shalt.err (!%p3832_p7)
}
 0x88c   :  { %2802 = dma.vmem_to_hbm [thread:$0]  %s2800_s27, 16, %s4571_s6, [#allocation3]  }
 0x88d   :  { %3836 = dma.done.wait [#allocation3], 16  }
 0x88e   :  { %3837 = vsyncadd [#allocation3], 4294967280 }
 0x88f   :  { %2806 = vsyncpa [#allocation3], 1 }

</bundles_post_ra>
